<compile_context>
chip_gen: v6e
topology: v6e:2x2x1
jax: 0.10.0
libtpu: 0.0.40
codegen_flags: <defaults>
</compile_context>

<pallas_src>
import math

import jax
import jax.numpy as jnp
from jax.experimental import pallas as pl
from jax.experimental.pallas import tpu as pltpu


_VMEM_LIMIT_BYTES = 32 * 1024 * 1024  # explicit; > v5e default 16 MiB, < v7x 64 MiB phys
_STREAM_BUDGET_BYTES = 8 * 1024 * 1024  # budget for the double-buffered streamed blocks


def _round_up(n, m):
    return ((n + m - 1) // m) * m


def _permute_gates(m, H):
    """Reorder gate blocks along the leading 4H axis: (i, f, g, o) -> (i, f, o, g)."""
    return jnp.concatenate([m[: 2 * H], m[3 * H: 4 * H], m[2 * H: 3 * H]], axis=0)


def _pick_batch_tile(B):
    # Small batches: a single VMEM-resident tile (gridding batch on 1-TC chips is
    # just a serial loop with per-step overhead and a smaller matmul M).  Large
    # batches: MXU-pass-wide tiles (256 for v6e/v7x, 128 for v5e) which also gives
    # >= 2 tiles so the "parallel" batch axis can shard across v7x's two TCs.
    if B <= 256:
        return B
    for tb in (256, 128, 64, 32, 16, 8):
        if B % tb == 0:
            return tb
    return 256  # non-dividing B: final tile is padded; padded rows are discarded


def _pick_time_chunk(T, TB, nin, H):
    # Largest divisor of T (static fori_loop trip count) whose double-buffered
    # streamed blocks (x chunk + hidden-seq chunk, f32) fit the streaming budget.
    per_step_bytes = TB * (nin + H) * 4 * 2  # x2 for double buffering
    tc_max = max(1, _STREAM_BUDGET_BYTES // per_step_bytes)
    tc = 1
    for d in range(1, T + 1):
        if T % d == 0 and d <= tc_max:
            tc = d
    return tc


# ----------------------------------------------------------------------------
# Shared recurrence body (input projection fused; per-chunk sequential scan)
# ----------------------------------------------------------------------------
def _recurrence(x_ref, wih_ref, whh_ref, b_ref, h_sc, c_sc, hseq_ref=None):
    # x_ref  : (Tc, TB, nin) streamed input chunk
    # wih_ref: (nin, 4H)  input weights (gate order i,f,o,g), VMEM-resident
    # whh_ref: (H, 4H)    recurrent weights (gate order i,f,o,g), VMEM-resident
    # b_ref  : (1, 4H)    fused bias b_ih + b_hh (permuted), f32
    # h_sc/c_sc: (TB, H) f32 state, persistent across time chunks
    Tc = x_ref.shape[0]
    H = whh_ref.shape[0]
    mxu_dtype = wih_ref.dtype          # bf16 (or f32) MXU operands, f32 accumulate
    wih = wih_ref[...]
    whh = whh_ref[...]
    bias = b_ref[...].astype(jnp.float32)

    def step(t, carry):
        gates = (
            jnp.dot(x_ref[t].astype(mxu_dtype), wih, preferred_element_type=jnp.float32)
            + jnp.dot(h_sc[...].astype(mxu_dtype), whh, preferred_element_type=jnp.float32)
            + bias
        )  # (TB, 4H), gate order i, f, o, g
        sig = jax.nn.sigmoid(gates[:, : 3 * H])   # one contiguous sigmoid slab
        i = sig[:, :H]
        f = sig[:, H: 2 * H]
        o = sig[:, 2 * H: 3 * H]
        g = jnp.tanh(gates[:, 3 * H:])
        c = f * c_sc[...] + i * g
        h = o * jnp.tanh(c)
        c_sc[...] = c
        h_sc[...] = h
        if hseq_ref is not None:
            hseq_ref[t] = h.astype(hseq_ref.dtype)
        return carry

    jax.lax.fori_loop(0, Tc, step, 0, unroll=(Tc <= 16))


# ----------------------------------------------------------------------------
# Kernel A: one LSTM layer, emits the full hidden sequence (intermediate layers)
# ----------------------------------------------------------------------------
def _lstm_layer_seq_kernel(x_ref, wih_ref, whh_ref, b_ref, hseq_ref, h_sc, c_sc):
    @pl.when(pl.program_id(1) == 0)     # new batch tile -> reset state
    def _():
        h_sc[...] = jnp.zeros_like(h_sc)
        c_sc[...] = jnp.zeros_like(c_sc)

    _recurrence(x_ref, wih_ref, whh_ref, b_ref, h_sc, c_sc, hseq_ref=hseq_ref)


def lstm_layer_seq(x_tbf, wih_t, whh_t, b_row, *, TB, Tc, out_dtype):
    T, B, nin = x_tbf.shape
    H4 = wih_t.shape[1]
    H = H4 // 4
    grid = (pl.cdiv(B, TB), T // Tc)
    return pl.pallas_call(
        _lstm_layer_seq_kernel,
        out_shape=jax.ShapeDtypeStruct((T, B, H), out_dtype),
        grid_spec=pltpu.PrefetchScalarGridSpec(
            num_scalar_prefetch=0,
            grid=grid,
            in_specs=[
                pl.BlockSpec((Tc, TB, nin), lambda b, t: (t, b, 0)),   # streamed x chunk
                pl.BlockSpec((nin, H4), lambda b, t: (0, 0)),          # resident weights
                pl.BlockSpec((H, H4), lambda b, t: (0, 0)),
                pl.BlockSpec((1, H4), lambda b, t: (0, 0)),
            ],
            out_specs=pl.BlockSpec((Tc, TB, H), lambda b, t: (t, b, 0)),
            scratch_shapes=[
                pltpu.VMEM((TB, H), jnp.float32),   # h state, persists across time chunks
                pltpu.VMEM((TB, H), jnp.float32),   # c state
            ],
        ),
        compiler_params=pltpu.CompilerParams(
            dimension_semantics=("parallel", "arbitrary"),
            vmem_limit_bytes=_VMEM_LIMIT_BYTES,
        ),
    )(x_tbf, wih_t, whh_t, b_row)


# ----------------------------------------------------------------------------
# Kernel B: last LSTM layer fused with the head (ReLU + linear); no (T,B,H) writeback
# ----------------------------------------------------------------------------
def _lstm_layer_head_kernel(x_ref, wih_ref, whh_ref, b_ref, wlin_ref, blin_ref,
                            out_ref, rep_ref, h_sc, c_sc):
    @pl.when(pl.program_id(1) == 0)
    def _():
        h_sc[...] = jnp.zeros_like(h_sc)
        c_sc[...] = jnp.zeros_like(c_sc)

    _recurrence(x_ref, wih_ref, whh_ref, b_ref, h_sc, c_sc, hseq_ref=None)

    @pl.when(pl.program_id(1) == pl.num_programs(1) - 1)
    def _():
        rep = jnp.maximum(h_sc[...], 0.0)                # ReLU on the last hidden state
        rep_ref[...] = rep.astype(rep_ref.dtype)
        out = jnp.dot(rep.astype(wlin_ref.dtype), wlin_ref[...],
                      preferred_element_type=jnp.float32) + blin_ref[...].astype(jnp.float32)
        out_ref[...] = out.astype(out_ref.dtype)


def lstm_layer_head(x_tbf, wih_t, whh_t, b_row, wlin_t, blin_row, *, TB, Tc, out_dtype):
    T, B, nin = x_tbf.shape
    H4 = wih_t.shape[1]
    H = H4 // 4
    OUTP = wlin_t.shape[1]
    grid = (pl.cdiv(B, TB), T // Tc)
    return pl.pallas_call(
        _lstm_layer_head_kernel,
        out_shape=(
            jax.ShapeDtypeStruct((B, OUTP), out_dtype),   # logits (lane-dense, padded)
            jax.ShapeDtypeStruct((B, H), out_dtype),      # rep
        ),
        grid_spec=pltpu.PrefetchScalarGridSpec(
            num_scalar_prefetch=0,
            grid=grid,
            in_specs=[
                pl.BlockSpec((Tc, TB, nin), lambda b, t: (t, b, 0)),
                pl.BlockSpec((nin, H4), lambda b, t: (0, 0)),
                pl.BlockSpec((H, H4), lambda b, t: (0, 0)),
                pl.BlockSpec((1, H4), lambda b, t: (0, 0)),
                pl.BlockSpec((H, OUTP), lambda b, t: (0, 0)),
                pl.BlockSpec((1, OUTP), lambda b, t: (0, 0)),
            ],
            out_specs=(
                # Same block for every time chunk -> stays resident; written only
                # under @pl.when(t == last).
                pl.BlockSpec((TB, OUTP), lambda b, t: (b, 0)),
                pl.BlockSpec((TB, H), lambda b, t: (b, 0)),
            ),
            scratch_shapes=[
                pltpu.VMEM((TB, H), jnp.float32),
                pltpu.VMEM((TB, H), jnp.float32),
            ],
        ),
        compiler_params=pltpu.CompilerParams(
            dimension_semantics=("parallel", "arbitrary"),
            vmem_limit_bytes=_VMEM_LIMIT_BYTES,
        ),
    )(x_tbf, wih_t, whh_t, b_row, wlin_t, blin_row)


# ----------------------------------------------------------------------------
# Wrapper: full InsLSTMRep forward
# ----------------------------------------------------------------------------
def ins_lstm_rep_forward(x, lstm_params, wlin, blin, *,
                         mxu_dtype=jnp.bfloat16,
                         interlayer_dtype=jnp.float32):
    """x: (B, T, input_length), batch-first like nn.LSTM(batch_first=True).

    lstm_params: list of (W_ih (4H, nin), W_hh (4H, H), b_ih (4H,), b_hh (4H,))
    wlin: (narchs*tgt_length, H), blin: (narchs*tgt_length,)
    mxu_dtype: dtype of MXU operands (bf16 for perf, f32 for bitwise fidelity);
               accumulation and h/c state are always f32.
    interlayer_dtype: precision of the layer-to-layer hidden sequence in HBM.
    Returns (logits (B, narchs*tgt_length), rep (B, H)).
    """
    B, T, _ = x.shape
    H_last = lstm_params[-1][1].shape[1]
    OUT = wlin.shape[0]
    OUTP = _round_up(OUT, 128)          # lane-dense logits store

    TB = _pick_batch_tile(B)

    # Head weights: transpose + zero-pad the output dim to a multiple of 128.
    wlin_t = jnp.zeros((H_last, OUTP), jnp.float32).at[:, :OUT].set(
        jnp.transpose(wlin).astype(jnp.float32)).astype(mxu_dtype)
    blin_row = jnp.zeros((1, OUTP), jnp.float32).at[0, :OUT].set(blin.astype(jnp.float32))

    h_tbf = jnp.transpose(x, (1, 0, 2)).astype(interlayer_dtype)  # time-leading (T, B, nin)
    nlayers = len(lstm_params)
    out_p = rep = None
    for li, (wih, whh, bih, bhh) in enumerate(lstm_params):
        Hl = whh.shape[1]
        nin = wih.shape[1]
        # Gate permutation (i,f,g,o) -> (i,f,o,g) + transpose; one-time wrapper cost.
        wih_t = jnp.transpose(_permute_gates(wih, Hl)).astype(mxu_dtype)      # (nin, 4H)
        whh_t = jnp.transpose(_permute_gates(whh, Hl)).astype(mxu_dtype)      # (H, 4H)
        b_row = _permute_gates(bih + bhh, Hl)[None, :].astype(jnp.float32)    # (1, 4H)
        Tc = _pick_time_chunk(T, TB, nin, Hl)
        if li < nlayers - 1:
            h_tbf = lstm_layer_seq(h_tbf, wih_t, whh_t, b_row,
                                   TB=TB, Tc=Tc, out_dtype=interlayer_dtype)
        else:
            out_p, rep = lstm_layer_head(h_tbf, wih_t, whh_t, b_row, wlin_t, blin_row,
                                         TB=TB, Tc=Tc, out_dtype=x.dtype)
    out = out_p[:, :OUT]
    return out, rep


# ----------------------------------------------------------------------------
# Pure-JAX reference (mirrors the PyTorch module) for correctness checking
# ----------------------------------------------------------------------------
def ref_forward(x, lstm_params, wlin, blin):
    B, T, _ = x.shape
    h_in = x
    for (wih, whh, bih, bhh) in lstm_params:
        H = whh.shape[1]
        h = jnp.zeros((B, H), jnp.float32)
        c = jnp.zeros((B, H), jnp.float32)
        outs = []
        for t in range(T):
            g = h_in[:, t, :] @ wih.T + bih + h @ whh.T + bhh
            i = jax.nn.sigmoid(g[:, :H])
            f = jax.nn.sigmoid(g[:, H:2 * H])
            gg = jnp.tanh(g[:, 2 * H:3 * H])
            o = jax.nn.sigmoid(g[:, 3 * H:])
            c = f * c + i * gg
            h = o * jnp.tanh(c)
            outs.append(h)
        h_in = jnp.stack(outs, axis=1)
    rep = jnp.maximum(h_in[:, -1, :], 0.0)
    out = rep @ wlin.T + blin
    return out, rep


if __name__ == "__main__":
    B, T = 2, 8            # batch, seq_length
    NIN = 32               # input_length
    H = 32                 # nhidden
    NLAYERS = 2
    NARCHS, TGT_LEN = 1, 16
    OUT = NARCHS * TGT_LEN

    key = jax.random.PRNGKey(0)
    keys = jax.random.split(key, 3 + 4 * NLAYERS)
    x = jax.random.normal(keys[0], (B, T, NIN), dtype=jnp.float32)

    scale = 1.0 / math.sqrt(H)
    lstm_params = []
    k = 1
    for layer in range(NLAYERS):
        nin_l = NIN if layer == 0 else H
        wih = jax.random.uniform(keys[k], (4 * H, nin_l), minval=-scale, maxval=scale); k += 1
        whh = jax.random.uniform(keys[k], (4 * H, H), minval=-scale, maxval=scale); k += 1
        bih = jax.random.uniform(keys[k], (4 * H,), minval=-scale, maxval=scale); k += 1
        bhh = jax.random.uniform(keys[k], (4 * H,), minval=-scale, maxval=scale); k += 1
        lstm_params.append((wih, whh, bih, bhh))
    wlin = jax.random.uniform(keys[k], (OUT, H), minval=-scale, maxval=scale)
    blin = jax.random.uniform(keys[k + 1], (OUT,), minval=-scale, maxval=scale)

    out_ref_v, rep_ref_v = ref_forward(x, lstm_params, wlin, blin)

    # f32 MXU operands: matches the f32 reference tightly.
    out32, rep32 = ins_lstm_rep_forward(x, lstm_params, wlin, blin, mxu_dtype=jnp.float32)
    out32 = jax.block_until_ready(out32)
    rep32 = jax.block_until_ready(rep32)
    assert out32.shape == (B, OUT) and rep32.shape == (B, H)
    assert jnp.allclose(rep32, rep_ref_v, atol=1e-4, rtol=1e-4), "rep mismatch (f32 MXU)"
    assert jnp.allclose(out32, out_ref_v, atol=1e-4, rtol=1e-4), "logits mismatch (f32 MXU)"

    # bf16 MXU operands / f32 accumulation (performance config): relaxed tolerance.
    outbf, repbf = ins_lstm_rep_forward(x, lstm_params, wlin, blin, mxu_dtype=jnp.bfloat16)
    outbf = jax.block_until_ready(outbf)
    repbf = jax.block_until_ready(repbf)
    assert outbf.shape == (B, OUT) and repbf.shape == (B, H)
    assert jnp.allclose(repbf, rep_ref_v, atol=5e-2, rtol=5e-2), "rep mismatch (bf16 MXU)"
    assert jnp.allclose(outbf, out_ref_v, atol=5e-2, rtol=5e-2), "logits mismatch (bf16 MXU)"

    print("KERNEL_OK")
</pallas_src>

<mosaic_0001>
module attributes {stable_mosaic.version = 11 : i64} {
  func.func @_lstm_layer_seq_kernel(%arg0: i32, %arg1: i32, %arg2: memref<8x2x32xf32, #tpu.memory_space<vmem>>, %arg3: memref<32x128xf32, #tpu.memory_space<vmem>>, %arg4: memref<32x128xf32, #tpu.memory_space<vmem>>, %arg5: memref<1x128xf32, #tpu.memory_space<vmem>>, %arg6: memref<8x2x32xf32, #tpu.memory_space<vmem>>, %arg7: memref<2x32xf32, #tpu.memory_space<vmem>>, %arg8: memref<2x32xf32, #tpu.memory_space<vmem>>) attributes {dimension_semantics = [#tpu.dimension_semantics<parallel>, #tpu.dimension_semantics<arbitrary>], iteration_bounds = array<i64: 1, 1>, scalar_prefetch = 0 : i64, scratch_operands = 2 : i64, tpu.core_type = #tpu.core_type<tc>, window_params = [{transform_indices = @transform_0, window_bounds = array<i64: 8, 2, 32>}, {pipeline_mode = #tpu.pipeline_mode<synchronous>, transform_indices = @transform_1, window_bounds = array<i64: 32, 128>}, {pipeline_mode = #tpu.pipeline_mode<synchronous>, transform_indices = @transform_2, window_bounds = array<i64: 32, 128>}, {pipeline_mode = #tpu.pipeline_mode<synchronous>, transform_indices = @transform_3, window_bounds = array<i64: 1, 128>}, {transform_indices = @transform_4, window_bounds = array<i64: 8, 2, 32>}]} {
    %c0_i32 = arith.constant 0 : i32
    %0 = arith.cmpi eq, %arg1, %c0_i32 : i32
    %1 = arith.extui %0 : i1 to i32
    %c0_i32_0 = arith.constant 0 : i32
    %2 = arith.cmpi ne, %1, %c0_i32_0 : i32
    scf.if %2 {
      %cst_126 = arith.constant 0.000000e+00 : f32
      %262 = vector.broadcast %cst_126 : f32 to vector<2x32xf32>
      %c0_127 = arith.constant 0 : index
      %c0_128 = arith.constant 0 : index
      %263 = vector.load %arg7[%c0_127, %c0_128] : memref<2x32xf32, #tpu.memory_space<vmem>>, vector<2x32xf32>
      tpu.vector_store %arg7[%c0_127, %c0_128], %262 {strides = array<i32>} : memref<2x32xf32, #tpu.memory_space<vmem>>, vector<2x32xf32>,
      %cst_129 = arith.constant 0.000000e+00 : f32
      %264 = vector.broadcast %cst_129 : f32 to vector<2x32xf32>
      %c0_130 = arith.constant 0 : index
      %c0_131 = arith.constant 0 : index
      %265 = vector.load %arg8[%c0_130, %c0_131] : memref<2x32xf32, #tpu.memory_space<vmem>>, vector<2x32xf32>
      tpu.vector_store %arg8[%c0_130, %c0_131], %264 {strides = array<i32>} : memref<2x32xf32, #tpu.memory_space<vmem>>, vector<2x32xf32>,
    } else {
    }
    %c0 = arith.constant 0 : index
    %c0_1 = arith.constant 0 : index
    %3 = vector.load %arg3[%c0, %c0_1] : memref<32x128xf32, #tpu.memory_space<vmem>>, vector<32x128xf32>
    %c0_2 = arith.constant 0 : index
    %c0_3 = arith.constant 0 : index
    %4 = vector.load %arg4[%c0_2, %c0_3] : memref<32x128xf32, #tpu.memory_space<vmem>>, vector<32x128xf32>
    %c0_4 = arith.constant 0 : index
    %c0_5 = arith.constant 0 : index
    %5 = vector.load %arg5[%c0_4, %c0_5] : memref<1x128xf32, #tpu.memory_space<vmem>>, vector<1x128xf32>
    %c0_i32_6 = arith.constant 0 : i32
    %6 = arith.index_cast %c0_i32_6 : i32 to index
    %c0_7 = arith.constant 0 : index
    %c0_8 = arith.constant 0 : index
    %7 = vector.load %arg2[%6, %c0_7, %c0_8] : memref<8x2x32xf32, #tpu.memory_space<vmem>>, vector<1x2x32xf32>
    %8 = vector.shape_cast %7 : vector<1x2x32xf32> to vector<2x32xf32>
    %cst = arith.constant dense<0.000000e+00> : vector<2x128xf32>
    %9 = tpu.matmul %8, %3, %cst {dimension_numbers = #tpu.dot_dimension_numbers<[1], [0], [0], [1], [0, 0, 1, 1], [], []>} : vector<2x32xf32>, vector<32x128xf32>, vector<2x128xf32> -> vector<2x128xf32>
    %c0_9 = arith.constant 0 : index
    %c0_10 = arith.constant 0 : index
    %10 = vector.load %arg7[%c0_9, %c0_10] : memref<2x32xf32, #tpu.memory_space<vmem>>, vector<2x32xf32>
    %cst_11 = arith.constant dense<0.000000e+00> : vector<2x128xf32>
    %11 = tpu.matmul %10, %4, %cst_11 {dimension_numbers = #tpu.dot_dimension_numbers<[1], [0], [0], [1], [0, 0, 1, 1], [], []>} : vector<2x32xf32>, vector<32x128xf32>, vector<2x128xf32> -> vector<2x128xf32>
    %12 = arith.addf %9, %11 : vector<2x128xf32>
    %13 = vector.broadcast %5 : vector<1x128xf32> to vector<2x128xf32>
    %14 = arith.addf %12, %13 : vector<2x128xf32>
    %15 = vector.extract_strided_slice %14 {offsets = [0, 0], sizes = [2, 96], strides = [1, 1]} : vector<2x128xf32> to vector<2x96xf32>
    %16 = arith.negf %15 : vector<2x96xf32>
    %17 = math.exp %16 : vector<2x96xf32>
    %cst_12 = arith.constant 1.000000e+00 : f32
    %18 = vector.broadcast %cst_12 : f32 to vector<2x96xf32>
    %19 = arith.addf %18, %17 : vector<2x96xf32>
    %20 = arith.divf %18, %19 : vector<2x96xf32>
    %21 = vector.extract_strided_slice %20 {offsets = [0, 0], sizes = [2, 32], strides = [1, 1]} : vector<2x96xf32> to vector<2x32xf32>
    %22 = vector.extract_strided_slice %20 {offsets = [0, 32], sizes = [2, 32], strides = [1, 1]} : vector<2x96xf32> to vector<2x32xf32>
    %23 = vector.extract_strided_slice %20 {offsets = [0, 64], sizes = [2, 32], strides = [1, 1]} : vector<2x96xf32> to vector<2x32xf32>
    %24 = vector.extract_strided_slice %14 {offsets = [0, 96], sizes = [2, 32], strides = [1, 1]} : vector<2x128xf32> to vector<2x32xf32>
    %25 = math.tanh %24 : vector<2x32xf32>
    %c0_13 = arith.constant 0 : index
    %c0_14 = arith.constant 0 : index
    %26 = vector.load %arg8[%c0_13, %c0_14] : memref<2x32xf32, #tpu.memory_space<vmem>>, vector<2x32xf32>
    %27 = arith.mulf %22, %26 : vector<2x32xf32>
    %28 = arith.mulf %21, %25 : vector<2x32xf32>
    %29 = arith.addf %27, %28 : vector<2x32xf32>
    %30 = math.tanh %29 : vector<2x32xf32>
    %31 = arith.mulf %23, %30 : vector<2x32xf32>
    %c0_15 = arith.constant 0 : index
    %c0_16 = arith.constant 0 : index
    %32 = vector.load %arg8[%c0_15, %c0_16] : memref<2x32xf32, #tpu.memory_space<vmem>>, vector<2x32xf32>
    tpu.vector_store %arg8[%c0_15, %c0_16], %29 {strides = array<i32>} : memref<2x32xf32, #tpu.memory_space<vmem>>, vector<2x32xf32>,
    %c0_17 = arith.constant 0 : index
    %c0_18 = arith.constant 0 : index
    %33 = vector.load %arg7[%c0_17, %c0_18] : memref<2x32xf32, #tpu.memory_space<vmem>>, vector<2x32xf32>
    tpu.vector_store %arg7[%c0_17, %c0_18], %31 {strides = array<i32>} : memref<2x32xf32, #tpu.memory_space<vmem>>, vector<2x32xf32>,
    %34 = arith.index_cast %c0_i32_6 : i32 to index
    %c0_19 = arith.constant 0 : index
    %c0_20 = arith.constant 0 : index
    %35 = vector.load %arg6[%34, %c0_19, %c0_20] : memref<8x2x32xf32, #tpu.memory_space<vmem>>, vector<1x2x32xf32>
    %36 = vector.shape_cast %35 : vector<1x2x32xf32> to vector<2x32xf32>
    %37 = vector.shape_cast %31 : vector<2x32xf32> to vector<1x2x32xf32>
    tpu.vector_store %arg6[%34, %c0_19, %c0_20], %37 {strides = array<i32>} : memref<8x2x32xf32, #tpu.memory_space<vmem>>, vector<1x2x32xf32>,
    %c1_i32 = arith.constant 1 : i32
    %38 = arith.index_cast %c1_i32 : i32 to index
    %c0_21 = arith.constant 0 : index
    %c0_22 = arith.constant 0 : index
    %39 = vector.load %arg2[%38, %c0_21, %c0_22] : memref<8x2x32xf32, #tpu.memory_space<vmem>>, vector<1x2x32xf32>
    %40 = vector.shape_cast %39 : vector<1x2x32xf32> to vector<2x32xf32>
    %cst_23 = arith.constant dense<0.000000e+00> : vector<2x128xf32>
    %41 = tpu.matmul %40, %3, %cst_23 {dimension_numbers = #tpu.dot_dimension_numbers<[1], [0], [0], [1], [0, 0, 1, 1], [], []>} : vector<2x32xf32>, vector<32x128xf32>, vector<2x128xf32> -> vector<2x128xf32>
    %c0_24 = arith.constant 0 : index
    %c0_25 = arith.constant 0 : index
    %42 = vector.load %arg7[%c0_24, %c0_25] : memref<2x32xf32, #tpu.memory_space<vmem>>, vector<2x32xf32>
    %cst_26 = arith.constant dense<0.000000e+00> : vector<2x128xf32>
    %43 = tpu.matmul %42, %4, %cst_26 {dimension_numbers = #tpu.dot_dimension_numbers<[1], [0], [0], [1], [0, 0, 1, 1], [], []>} : vector<2x32xf32>, vector<32x128xf32>, vector<2x128xf32> -> vector<2x128xf32>
    %44 = arith.addf %41, %43 : vector<2x128xf32>
    %45 = vector.broadcast %5 : vector<1x128xf32> to vector<2x128xf32>
    %46 = arith.addf %44, %45 : vector<2x128xf32>
    %47 = vector.extract_strided_slice %46 {offsets = [0, 0], sizes = [2, 96], strides = [1, 1]} : vector<2x128xf32> to vector<2x96xf32>
    %48 = arith.negf %47 : vector<2x96xf32>
    %49 = math.exp %48 : vector<2x96xf32>
    %cst_27 = arith.constant 1.000000e+00 : f32
    %50 = vector.broadcast %cst_27 : f32 to vector<2x96xf32>
    %51 = arith.addf %50, %49 : vector<2x96xf32>
    %52 = arith.divf %50, %51 : vector<2x96xf32>
    %53 = vector.extract_strided_slice %52 {offsets = [0, 0], sizes = [2, 32], strides = [1, 1]} : vector<2x96xf32> to vector<2x32xf32>
    %54 = vector.extract_strided_slice %52 {offsets = [0, 32], sizes = [2, 32], strides = [1, 1]} : vector<2x96xf32> to vector<2x32xf32>
    %55 = vector.extract_strided_slice %52 {offsets = [0, 64], sizes = [2, 32], strides = [1, 1]} : vector<2x96xf32> to vector<2x32xf32>
    %56 = vector.extract_strided_slice %46 {offsets = [0, 96], sizes = [2, 32], strides = [1, 1]} : vector<2x128xf32> to vector<2x32xf32>
    %57 = math.tanh %56 : vector<2x32xf32>
    %c0_28 = arith.constant 0 : index
    %c0_29 = arith.constant 0 : index
    %58 = vector.load %arg8[%c0_28, %c0_29] : memref<2x32xf32, #tpu.memory_space<vmem>>, vector<2x32xf32>
    %59 = arith.mulf %54, %58 : vector<2x32xf32>
    %60 = arith.mulf %53, %57 : vector<2x32xf32>
    %61 = arith.addf %59, %60 : vector<2x32xf32>
    %62 = math.tanh %61 : vector<2x32xf32>
    %63 = arith.mulf %55, %62 : vector<2x32xf32>
    %c0_30 = arith.constant 0 : index
    %c0_31 = arith.constant 0 : index
    %64 = vector.load %arg8[%c0_30, %c0_31] : memref<2x32xf32, #tpu.memory_space<vmem>>, vector<2x32xf32>
    tpu.vector_store %arg8[%c0_30, %c0_31], %61 {strides = array<i32>} : memref<2x32xf32, #tpu.memory_space<vmem>>, vector<2x32xf32>,
    %c0_32 = arith.constant 0 : index
    %c0_33 = arith.constant 0 : index
    %65 = vector.load %arg7[%c0_32, %c0_33] : memref<2x32xf32, #tpu.memory_space<vmem>>, vector<2x32xf32>
    tpu.vector_store %arg7[%c0_32, %c0_33], %63 {strides = array<i32>} : memref<2x32xf32, #tpu.memory_space<vmem>>, vector<2x32xf32>,
    %66 = arith.index_cast %c1_i32 : i32 to index
    %c0_34 = arith.constant 0 : index
    %c0_35 = arith.constant 0 : index
    %67 = vector.load %arg6[%66, %c0_34, %c0_35] : memref<8x2x32xf32, #tpu.memory_space<vmem>>, vector<1x2x32xf32>
    %68 = vector.shape_cast %67 : vector<1x2x32xf32> to vector<2x32xf32>
    %69 = vector.shape_cast %63 : vector<2x32xf32> to vector<1x2x32xf32>
    tpu.vector_store %arg6[%66, %c0_34, %c0_35], %69 {strides = array<i32>} : memref<8x2x32xf32, #tpu.memory_space<vmem>>, vector<1x2x32xf32>,
    %c2_i32 = arith.constant 2 : i32
    %70 = arith.index_cast %c2_i32 : i32 to index
    %c0_36 = arith.constant 0 : index
    %c0_37 = arith.constant 0 : index
    %71 = vector.load %arg2[%70, %c0_36, %c0_37] : memref<8x2x32xf32, #tpu.memory_space<vmem>>, vector<1x2x32xf32>
    %72 = vector.shape_cast %71 : vector<1x2x32xf32> to vector<2x32xf32>
    %cst_38 = arith.constant dense<0.000000e+00> : vector<2x128xf32>
    %73 = tpu.matmul %72, %3, %cst_38 {dimension_numbers = #tpu.dot_dimension_numbers<[1], [0], [0], [1], [0, 0, 1, 1], [], []>} : vector<2x32xf32>, vector<32x128xf32>, vector<2x128xf32> -> vector<2x128xf32>
    %c0_39 = arith.constant 0 : index
    %c0_40 = arith.constant 0 : index
    %74 = vector.load %arg7[%c0_39, %c0_40] : memref<2x32xf32, #tpu.memory_space<vmem>>, vector<2x32xf32>
    %cst_41 = arith.constant dense<0.000000e+00> : vector<2x128xf32>
    %75 = tpu.matmul %74, %4, %cst_41 {dimension_numbers = #tpu.dot_dimension_numbers<[1], [0], [0], [1], [0, 0, 1, 1], [], []>} : vector<2x32xf32>, vector<32x128xf32>, vector<2x128xf32> -> vector<2x128xf32>
    %76 = arith.addf %73, %75 : vector<2x128xf32>
    %77 = vector.broadcast %5 : vector<1x128xf32> to vector<2x128xf32>
    %78 = arith.addf %76, %77 : vector<2x128xf32>
    %79 = vector.extract_strided_slice %78 {offsets = [0, 0], sizes = [2, 96], strides = [1, 1]} : vector<2x128xf32> to vector<2x96xf32>
    %80 = arith.negf %79 : vector<2x96xf32>
    %81 = math.exp %80 : vector<2x96xf32>
    %cst_42 = arith.constant 1.000000e+00 : f32
    %82 = vector.broadcast %cst_42 : f32 to vector<2x96xf32>
    %83 = arith.addf %82, %81 : vector<2x96xf32>
    %84 = arith.divf %82, %83 : vector<2x96xf32>
    %85 = vector.extract_strided_slice %84 {offsets = [0, 0], sizes = [2, 32], strides = [1, 1]} : vector<2x96xf32> to vector<2x32xf32>
    %86 = vector.extract_strided_slice %84 {offsets = [0, 32], sizes = [2, 32], strides = [1, 1]} : vector<2x96xf32> to vector<2x32xf32>
    %87 = vector.extract_strided_slice %84 {offsets = [0, 64], sizes = [2, 32], strides = [1, 1]} : vector<2x96xf32> to vector<2x32xf32>
    %88 = vector.extract_strided_slice %78 {offsets = [0, 96], sizes = [2, 32], strides = [1, 1]} : vector<2x128xf32> to vector<2x32xf32>
    %89 = math.tanh %88 : vector<2x32xf32>
    %c0_43 = arith.constant 0 : index
    %c0_44 = arith.constant 0 : index
    %90 = vector.load %arg8[%c0_43, %c0_44] : memref<2x32xf32, #tpu.memory_space<vmem>>, vector<2x32xf32>
    %91 = arith.mulf %86, %90 : vector<2x32xf32>
    %92 = arith.mulf %85, %89 : vector<2x32xf32>
    %93 = arith.addf %91, %92 : vector<2x32xf32>
    %94 = math.tanh %93 : vector<2x32xf32>
    %95 = arith.mulf %87, %94 : vector<2x32xf32>
    %c0_45 = arith.constant 0 : index
    %c0_46 = arith.constant 0 : index
    %96 = vector.load %arg8[%c0_45, %c0_46] : memref<2x32xf32, #tpu.memory_space<vmem>>, vector<2x32xf32>
    tpu.vector_store %arg8[%c0_45, %c0_46], %93 {strides = array<i32>} : memref<2x32xf32, #tpu.memory_space<vmem>>, vector<2x32xf32>,
    %c0_47 = arith.constant 0 : index
    %c0_48 = arith.constant 0 : index
    %97 = vector.load %arg7[%c0_47, %c0_48] : memref<2x32xf32, #tpu.memory_space<vmem>>, vector<2x32xf32>
    tpu.vector_store %arg7[%c0_47, %c0_48], %95 {strides = array<i32>} : memref<2x32xf32, #tpu.memory_space<vmem>>, vector<2x32xf32>,
    %98 = arith.index_cast %c2_i32 : i32 to index
    %c0_49 = arith.constant 0 : index
    %c0_50 = arith.constant 0 : index
    %99 = vector.load %arg6[%98, %c0_49, %c0_50] : memref<8x2x32xf32, #tpu.memory_space<vmem>>, vector<1x2x32xf32>
    %100 = vector.shape_cast %99 : vector<1x2x32xf32> to vector<2x32xf32>
    %101 = vector.shape_cast %95 : vector<2x32xf32> to vector<1x2x32xf32>
    tpu.vector_store %arg6[%98, %c0_49, %c0_50], %101 {strides = array<i32>} : memref<8x2x32xf32, #tpu.memory_space<vmem>>, vector<1x2x32xf32>,
    %c3_i32 = arith.constant 3 : i32
    %102 = arith.index_cast %c3_i32 : i32 to index
    %c0_51 = arith.constant 0 : index
    %c0_52 = arith.constant 0 : index
    %103 = vector.load %arg2[%102, %c0_51, %c0_52] : memref<8x2x32xf32, #tpu.memory_space<vmem>>, vector<1x2x32xf32>
    %104 = vector.shape_cast %103 : vector<1x2x32xf32> to vector<2x32xf32>
    %cst_53 = arith.constant dense<0.000000e+00> : vector<2x128xf32>
    %105 = tpu.matmul %104, %3, %cst_53 {dimension_numbers = #tpu.dot_dimension_numbers<[1], [0], [0], [1], [0, 0, 1, 1], [], []>} : vector<2x32xf32>, vector<32x128xf32>, vector<2x128xf32> -> vector<2x128xf32>
    %c0_54 = arith.constant 0 : index
    %c0_55 = arith.constant 0 : index
    %106 = vector.load %arg7[%c0_54, %c0_55] : memref<2x32xf32, #tpu.memory_space<vmem>>, vector<2x32xf32>
    %cst_56 = arith.constant dense<0.000000e+00> : vector<2x128xf32>
    %107 = tpu.matmul %106, %4, %cst_56 {dimension_numbers = #tpu.dot_dimension_numbers<[1], [0], [0], [1], [0, 0, 1, 1], [], []>} : vector<2x32xf32>, vector<32x128xf32>, vector<2x128xf32> -> vector<2x128xf32>
    %108 = arith.addf %105, %107 : vector<2x128xf32>
    %109 = vector.broadcast %5 : vector<1x128xf32> to vector<2x128xf32>
    %110 = arith.addf %108, %109 : vector<2x128xf32>
    %111 = vector.extract_strided_slice %110 {offsets = [0, 0], sizes = [2, 96], strides = [1, 1]} : vector<2x128xf32> to vector<2x96xf32>
    %112 = arith.negf %111 : vector<2x96xf32>
    %113 = math.exp %112 : vector<2x96xf32>
    %cst_57 = arith.constant 1.000000e+00 : f32
    %114 = vector.broadcast %cst_57 : f32 to vector<2x96xf32>
    %115 = arith.addf %114, %113 : vector<2x96xf32>
    %116 = arith.divf %114, %115 : vector<2x96xf32>
    %117 = vector.extract_strided_slice %116 {offsets = [0, 0], sizes = [2, 32], strides = [1, 1]} : vector<2x96xf32> to vector<2x32xf32>
    %118 = vector.extract_strided_slice %116 {offsets = [0, 32], sizes = [2, 32], strides = [1, 1]} : vector<2x96xf32> to vector<2x32xf32>
    %119 = vector.extract_strided_slice %116 {offsets = [0, 64], sizes = [2, 32], strides = [1, 1]} : vector<2x96xf32> to vector<2x32xf32>
    %120 = vector.extract_strided_slice %110 {offsets = [0, 96], sizes = [2, 32], strides = [1, 1]} : vector<2x128xf32> to vector<2x32xf32>
    %121 = math.tanh %120 : vector<2x32xf32>
    %c0_58 = arith.constant 0 : index
    %c0_59 = arith.constant 0 : index
    %122 = vector.load %arg8[%c0_58, %c0_59] : memref<2x32xf32, #tpu.memory_space<vmem>>, vector<2x32xf32>
    %123 = arith.mulf %118, %122 : vector<2x32xf32>
    %124 = arith.mulf %117, %121 : vector<2x32xf32>
    %125 = arith.addf %123, %124 : vector<2x32xf32>
    %126 = math.tanh %125 : vector<2x32xf32>
    %127 = arith.mulf %119, %126 : vector<2x32xf32>
    %c0_60 = arith.constant 0 : index
    %c0_61 = arith.constant 0 : index
    %128 = vector.load %arg8[%c0_60, %c0_61] : memref<2x32xf32, #tpu.memory_space<vmem>>, vector<2x32xf32>
    tpu.vector_store %arg8[%c0_60, %c0_61], %125 {strides = array<i32>} : memref<2x32xf32, #tpu.memory_space<vmem>>, vector<2x32xf32>,
    %c0_62 = arith.constant 0 : index
    %c0_63 = arith.constant 0 : index
    %129 = vector.load %arg7[%c0_62, %c0_63] : memref<2x32xf32, #tpu.memory_space<vmem>>, vector<2x32xf32>
    tpu.vector_store %arg7[%c0_62, %c0_63], %127 {strides = array<i32>} : memref<2x32xf32, #tpu.memory_space<vmem>>, vector<2x32xf32>,
    %130 = arith.index_cast %c3_i32 : i32 to index
    %c0_64 = arith.constant 0 : index
    %c0_65 = arith.constant 0 : index
    %131 = vector.load %arg6[%130, %c0_64, %c0_65] : memref<8x2x32xf32, #tpu.memory_space<vmem>>, vector<1x2x32xf32>
    %132 = vector.shape_cast %131 : vector<1x2x32xf32> to vector<2x32xf32>
    %133 = vector.shape_cast %127 : vector<2x32xf32> to vector<1x2x32xf32>
    tpu.vector_store %arg6[%130, %c0_64, %c0_65], %133 {strides = array<i32>} : memref<8x2x32xf32, #tpu.memory_space<vmem>>, vector<1x2x32xf32>,
    %c4_i32 = arith.constant 4 : i32
    %134 = arith.index_cast %c4_i32 : i32 to index
    %c0_66 = arith.constant 0 : index
    %c0_67 = arith.constant 0 : index
    %135 = vector.load %arg2[%134, %c0_66, %c0_67] : memref<8x2x32xf32, #tpu.memory_space<vmem>>, vector<1x2x32xf32>
    %136 = vector.shape_cast %135 : vector<1x2x32xf32> to vector<2x32xf32>
    %cst_68 = arith.constant dense<0.000000e+00> : vector<2x128xf32>
    %137 = tpu.matmul %136, %3, %cst_68 {dimension_numbers = #tpu.dot_dimension_numbers<[1], [0], [0], [1], [0, 0, 1, 1], [], []>} : vector<2x32xf32>, vector<32x128xf32>, vector<2x128xf32> -> vector<2x128xf32>
    %c0_69 = arith.constant 0 : index
    %c0_70 = arith.constant 0 : index
    %138 = vector.load %arg7[%c0_69, %c0_70] : memref<2x32xf32, #tpu.memory_space<vmem>>, vector<2x32xf32>
    %cst_71 = arith.constant dense<0.000000e+00> : vector<2x128xf32>
    %139 = tpu.matmul %138, %4, %cst_71 {dimension_numbers = #tpu.dot_dimension_numbers<[1], [0], [0], [1], [0, 0, 1, 1], [], []>} : vector<2x32xf32>, vector<32x128xf32>, vector<2x128xf32> -> vector<2x128xf32>
    %140 = arith.addf %137, %139 : vector<2x128xf32>
    %141 = vector.broadcast %5 : vector<1x128xf32> to vector<2x128xf32>
    %142 = arith.addf %140, %141 : vector<2x128xf32>
    %143 = vector.extract_strided_slice %142 {offsets = [0, 0], sizes = [2, 96], strides = [1, 1]} : vector<2x128xf32> to vector<2x96xf32>
    %144 = arith.negf %143 : vector<2x96xf32>
    %145 = math.exp %144 : vector<2x96xf32>
    %cst_72 = arith.constant 1.000000e+00 : f32
    %146 = vector.broadcast %cst_72 : f32 to vector<2x96xf32>
    %147 = arith.addf %146, %145 : vector<2x96xf32>
    %148 = arith.divf %146, %147 : vector<2x96xf32>
    %149 = vector.extract_strided_slice %148 {offsets = [0, 0], sizes = [2, 32], strides = [1, 1]} : vector<2x96xf32> to vector<2x32xf32>
    %150 = vector.extract_strided_slice %148 {offsets = [0, 32], sizes = [2, 32], strides = [1, 1]} : vector<2x96xf32> to vector<2x32xf32>
    %151 = vector.extract_strided_slice %148 {offsets = [0, 64], sizes = [2, 32], strides = [1, 1]} : vector<2x96xf32> to vector<2x32xf32>
    %152 = vector.extract_strided_slice %142 {offsets = [0, 96], sizes = [2, 32], strides = [1, 1]} : vector<2x128xf32> to vector<2x32xf32>
    %153 = math.tanh %152 : vector<2x32xf32>
    %c0_73 = arith.constant 0 : index
    %c0_74 = arith.constant 0 : index
    %154 = vector.load %arg8[%c0_73, %c0_74] : memref<2x32xf32, #tpu.memory_space<vmem>>, vector<2x32xf32>
    %155 = arith.mulf %150, %154 : vector<2x32xf32>
    %156 = arith.mulf %149, %153 : vector<2x32xf32>
    %157 = arith.addf %155, %156 : vector<2x32xf32>
    %158 = math.tanh %157 : vector<2x32xf32>
    %159 = arith.mulf %151, %158 : vector<2x32xf32>
    %c0_75 = arith.constant 0 : index
    %c0_76 = arith.constant 0 : index
    %160 = vector.load %arg8[%c0_75, %c0_76] : memref<2x32xf32, #tpu.memory_space<vmem>>, vector<2x32xf32>
    tpu.vector_store %arg8[%c0_75, %c0_76], %157 {strides = array<i32>} : memref<2x32xf32, #tpu.memory_space<vmem>>, vector<2x32xf32>,
    %c0_77 = arith.constant 0 : index
    %c0_78 = arith.constant 0 : index
    %161 = vector.load %arg7[%c0_77, %c0_78] : memref<2x32xf32, #tpu.memory_space<vmem>>, vector<2x32xf32>
    tpu.vector_store %arg7[%c0_77, %c0_78], %159 {strides = array<i32>} : memref<2x32xf32, #tpu.memory_space<vmem>>, vector<2x32xf32>,
    %162 = arith.index_cast %c4_i32 : i32 to index
    %c0_79 = arith.constant 0 : index
    %c0_80 = arith.constant 0 : index
    %163 = vector.load %arg6[%162, %c0_79, %c0_80] : memref<8x2x32xf32, #tpu.memory_space<vmem>>, vector<1x2x32xf32>
    %164 = vector.shape_cast %163 : vector<1x2x32xf32> to vector<2x32xf32>
    %165 = vector.shape_cast %159 : vector<2x32xf32> to vector<1x2x32xf32>
    tpu.vector_store %arg6[%162, %c0_79, %c0_80], %165 {strides = array<i32>} : memref<8x2x32xf32, #tpu.memory_space<vmem>>, vector<1x2x32xf32>,
    %c5_i32 = arith.constant 5 : i32
    %166 = arith.index_cast %c5_i32 : i32 to index
    %c0_81 = arith.constant 0 : index
    %c0_82 = arith.constant 0 : index
    %167 = vector.load %arg2[%166, %c0_81, %c0_82] : memref<8x2x32xf32, #tpu.memory_space<vmem>>, vector<1x2x32xf32>
    %168 = vector.shape_cast %167 : vector<1x2x32xf32> to vector<2x32xf32>
    %cst_83 = arith.constant dense<0.000000e+00> : vector<2x128xf32>
    %169 = tpu.matmul %168, %3, %cst_83 {dimension_numbers = #tpu.dot_dimension_numbers<[1], [0], [0], [1], [0, 0, 1, 1], [], []>} : vector<2x32xf32>, vector<32x128xf32>, vector<2x128xf32> -> vector<2x128xf32>
    %c0_84 = arith.constant 0 : index
    %c0_85 = arith.constant 0 : index
    %170 = vector.load %arg7[%c0_84, %c0_85] : memref<2x32xf32, #tpu.memory_space<vmem>>, vector<2x32xf32>
    %cst_86 = arith.constant dense<0.000000e+00> : vector<2x128xf32>
    %171 = tpu.matmul %170, %4, %cst_86 {dimension_numbers = #tpu.dot_dimension_numbers<[1], [0], [0], [1], [0, 0, 1, 1], [], []>} : vector<2x32xf32>, vector<32x128xf32>, vector<2x128xf32> -> vector<2x128xf32>
    %172 = arith.addf %169, %171 : vector<2x128xf32>
    %173 = vector.broadcast %5 : vector<1x128xf32> to vector<2x128xf32>
    %174 = arith.addf %172, %173 : vector<2x128xf32>
    %175 = vector.extract_strided_slice %174 {offsets = [0, 0], sizes = [2, 96], strides = [1, 1]} : vector<2x128xf32> to vector<2x96xf32>
    %176 = arith.negf %175 : vector<2x96xf32>
    %177 = math.exp %176 : vector<2x96xf32>
    %cst_87 = arith.constant 1.000000e+00 : f32
    %178 = vector.broadcast %cst_87 : f32 to vector<2x96xf32>
    %179 = arith.addf %178, %177 : vector<2x96xf32>
    %180 = arith.divf %178, %179 : vector<2x96xf32>
    %181 = vector.extract_strided_slice %180 {offsets = [0, 0], sizes = [2, 32], strides = [1, 1]} : vector<2x96xf32> to vector<2x32xf32>
    %182 = vector.extract_strided_slice %180 {offsets = [0, 32], sizes = [2, 32], strides = [1, 1]} : vector<2x96xf32> to vector<2x32xf32>
    %183 = vector.extract_strided_slice %180 {offsets = [0, 64], sizes = [2, 32], strides = [1, 1]} : vector<2x96xf32> to vector<2x32xf32>
    %184 = vector.extract_strided_slice %174 {offsets = [0, 96], sizes = [2, 32], strides = [1, 1]} : vector<2x128xf32> to vector<2x32xf32>
    %185 = math.tanh %184 : vector<2x32xf32>
    %c0_88 = arith.constant 0 : index
    %c0_89 = arith.constant 0 : index
    %186 = vector.load %arg8[%c0_88, %c0_89] : memref<2x32xf32, #tpu.memory_space<vmem>>, vector<2x32xf32>
    %187 = arith.mulf %182, %186 : vector<2x32xf32>
    %188 = arith.mulf %181, %185 : vector<2x32xf32>
    %189 = arith.addf %187, %188 : vector<2x32xf32>
    %190 = math.tanh %189 : vector<2x32xf32>
    %191 = arith.mulf %183, %190 : vector<2x32xf32>
    %c0_90 = arith.constant 0 : index
    %c0_91 = arith.constant 0 : index
    %192 = vector.load %arg8[%c0_90, %c0_91] : memref<2x32xf32, #tpu.memory_space<vmem>>, vector<2x32xf32>
    tpu.vector_store %arg8[%c0_90, %c0_91], %189 {strides = array<i32>} : memref<2x32xf32, #tpu.memory_space<vmem>>, vector<2x32xf32>,
    %c0_92 = arith.constant 0 : index
    %c0_93 = arith.constant 0 : index
    %193 = vector.load %arg7[%c0_92, %c0_93] : memref<2x32xf32, #tpu.memory_space<vmem>>, vector<2x32xf32>
    tpu.vector_store %arg7[%c0_92, %c0_93], %191 {strides = array<i32>} : memref<2x32xf32, #tpu.memory_space<vmem>>, vector<2x32xf32>,
    %194 = arith.index_cast %c5_i32 : i32 to index
    %c0_94 = arith.constant 0 : index
    %c0_95 = arith.constant 0 : index
    %195 = vector.load %arg6[%194, %c0_94, %c0_95] : memref<8x2x32xf32, #tpu.memory_space<vmem>>, vector<1x2x32xf32>
    %196 = vector.shape_cast %195 : vector<1x2x32xf32> to vector<2x32xf32>
    %197 = vector.shape_cast %191 : vector<2x32xf32> to vector<1x2x32xf32>
    tpu.vector_store %arg6[%194, %c0_94, %c0_95], %197 {strides = array<i32>} : memref<8x2x32xf32, #tpu.memory_space<vmem>>, vector<1x2x32xf32>,
    %c6_i32 = arith.constant 6 : i32
    %198 = arith.index_cast %c6_i32 : i32 to index
    %c0_96 = arith.constant 0 : index
    %c0_97 = arith.constant 0 : index
    %199 = vector.load %arg2[%198, %c0_96, %c0_97] : memref<8x2x32xf32, #tpu.memory_space<vmem>>, vector<1x2x32xf32>
    %200 = vector.shape_cast %199 : vector<1x2x32xf32> to vector<2x32xf32>
    %cst_98 = arith.constant dense<0.000000e+00> : vector<2x128xf32>
    %201 = tpu.matmul %200, %3, %cst_98 {dimension_numbers = #tpu.dot_dimension_numbers<[1], [0], [0], [1], [0, 0, 1, 1], [], []>} : vector<2x32xf32>, vector<32x128xf32>, vector<2x128xf32> -> vector<2x128xf32>
    %c0_99 = arith.constant 0 : index
    %c0_100 = arith.constant 0 : index
    %202 = vector.load %arg7[%c0_99, %c0_100] : memref<2x32xf32, #tpu.memory_space<vmem>>, vector<2x32xf32>
    %cst_101 = arith.constant dense<0.000000e+00> : vector<2x128xf32>
    %203 = tpu.matmul %202, %4, %cst_101 {dimension_numbers = #tpu.dot_dimension_numbers<[1], [0], [0], [1], [0, 0, 1, 1], [], []>} : vector<2x32xf32>, vector<32x128xf32>, vector<2x128xf32> -> vector<2x128xf32>
    %204 = arith.addf %201, %203 : vector<2x128xf32>
    %205 = vector.broadcast %5 : vector<1x128xf32> to vector<2x128xf32>
    %206 = arith.addf %204, %205 : vector<2x128xf32>
    %207 = vector.extract_strided_slice %206 {offsets = [0, 0], sizes = [2, 96], strides = [1, 1]} : vector<2x128xf32> to vector<2x96xf32>
    %208 = arith.negf %207 : vector<2x96xf32>
    %209 = math.exp %208 : vector<2x96xf32>
    %cst_102 = arith.constant 1.000000e+00 : f32
    %210 = vector.broadcast %cst_102 : f32 to vector<2x96xf32>
    %211 = arith.addf %210, %209 : vector<2x96xf32>
    %212 = arith.divf %210, %211 : vector<2x96xf32>
    %213 = vector.extract_strided_slice %212 {offsets = [0, 0], sizes = [2, 32], strides = [1, 1]} : vector<2x96xf32> to vector<2x32xf32>
    %214 = vector.extract_strided_slice %212 {offsets = [0, 32], sizes = [2, 32], strides = [1, 1]} : vector<2x96xf32> to vector<2x32xf32>
    %215 = vector.extract_strided_slice %212 {offsets = [0, 64], sizes = [2, 32], strides = [1, 1]} : vector<2x96xf32> to vector<2x32xf32>
    %216 = vector.extract_strided_slice %206 {offsets = [0, 96], sizes = [2, 32], strides = [1, 1]} : vector<2x128xf32> to vector<2x32xf32>
    %217 = math.tanh %216 : vector<2x32xf32>
    %c0_103 = arith.constant 0 : index
    %c0_104 = arith.constant 0 : index
    %218 = vector.load %arg8[%c0_103, %c0_104] : memref<2x32xf32, #tpu.memory_space<vmem>>, vector<2x32xf32>
    %219 = arith.mulf %214, %218 : vector<2x32xf32>
    %220 = arith.mulf %213, %217 : vector<2x32xf32>
    %221 = arith.addf %219, %220 : vector<2x32xf32>
    %222 = math.tanh %221 : vector<2x32xf32>
    %223 = arith.mulf %215, %222 : vector<2x32xf32>
    %c0_105 = arith.constant 0 : index
    %c0_106 = arith.constant 0 : index
    %224 = vector.load %arg8[%c0_105, %c0_106] : memref<2x32xf32, #tpu.memory_space<vmem>>, vector<2x32xf32>
    tpu.vector_store %arg8[%c0_105, %c0_106], %221 {strides = array<i32>} : memref<2x32xf32, #tpu.memory_space<vmem>>, vector<2x32xf32>,
    %c0_107 = arith.constant 0 : index
    %c0_108 = arith.constant 0 : index
    %225 = vector.load %arg7[%c0_107, %c0_108] : memref<2x32xf32, #tpu.memory_space<vmem>>, vector<2x32xf32>
    tpu.vector_store %arg7[%c0_107, %c0_108], %223 {strides = array<i32>} : memref<2x32xf32, #tpu.memory_space<vmem>>, vector<2x32xf32>,
    %226 = arith.index_cast %c6_i32 : i32 to index
    %c0_109 = arith.constant 0 : index
    %c0_110 = arith.constant 0 : index
    %227 = vector.load %arg6[%226, %c0_109, %c0_110] : memref<8x2x32xf32, #tpu.memory_space<vmem>>, vector<1x2x32xf32>
    %228 = vector.shape_cast %227 : vector<1x2x32xf32> to vector<2x32xf32>
    %229 = vector.shape_cast %223 : vector<2x32xf32> to vector<1x2x32xf32>
    tpu.vector_store %arg6[%226, %c0_109, %c0_110], %229 {strides = array<i32>} : memref<8x2x32xf32, #tpu.memory_space<vmem>>, vector<1x2x32xf32>,
    %c7_i32 = arith.constant 7 : i32
    %230 = arith.index_cast %c7_i32 : i32 to index
    %c0_111 = arith.constant 0 : index
    %c0_112 = arith.constant 0 : index
    %231 = vector.load %arg2[%230, %c0_111, %c0_112] : memref<8x2x32xf32, #tpu.memory_space<vmem>>, vector<1x2x32xf32>
    %232 = vector.shape_cast %231 : vector<1x2x32xf32> to vector<2x32xf32>
    %cst_113 = arith.constant dense<0.000000e+00> : vector<2x128xf32>
    %233 = tpu.matmul %232, %3, %cst_113 {dimension_numbers = #tpu.dot_dimension_numbers<[1], [0], [0], [1], [0, 0, 1, 1], [], []>} : vector<2x32xf32>, vector<32x128xf32>, vector<2x128xf32> -> vector<2x128xf32>
    %c0_114 = arith.constant 0 : index
    %c0_115 = arith.constant 0 : index
    %234 = vector.load %arg7[%c0_114, %c0_115] : memref<2x32xf32, #tpu.memory_space<vmem>>, vector<2x32xf32>
    %cst_116 = arith.constant dense<0.000000e+00> : vector<2x128xf32>
    %235 = tpu.matmul %234, %4, %cst_116 {dimension_numbers = #tpu.dot_dimension_numbers<[1], [0], [0], [1], [0, 0, 1, 1], [], []>} : vector<2x32xf32>, vector<32x128xf32>, vector<2x128xf32> -> vector<2x128xf32>
    %236 = arith.addf %233, %235 : vector<2x128xf32>
    %237 = vector.broadcast %5 : vector<1x128xf32> to vector<2x128xf32>
    %238 = arith.addf %236, %237 : vector<2x128xf32>
    %239 = vector.extract_strided_slice %238 {offsets = [0, 0], sizes = [2, 96], strides = [1, 1]} : vector<2x128xf32> to vector<2x96xf32>
    %240 = arith.negf %239 : vector<2x96xf32>
    %241 = math.exp %240 : vector<2x96xf32>
    %cst_117 = arith.constant 1.000000e+00 : f32
    %242 = vector.broadcast %cst_117 : f32 to vector<2x96xf32>
    %243 = arith.addf %242, %241 : vector<2x96xf32>
    %244 = arith.divf %242, %243 : vector<2x96xf32>
    %245 = vector.extract_strided_slice %244 {offsets = [0, 0], sizes = [2, 32], strides = [1, 1]} : vector<2x96xf32> to vector<2x32xf32>
    %246 = vector.extract_strided_slice %244 {offsets = [0, 32], sizes = [2, 32], strides = [1, 1]} : vector<2x96xf32> to vector<2x32xf32>
    %247 = vector.extract_strided_slice %244 {offsets = [0, 64], sizes = [2, 32], strides = [1, 1]} : vector<2x96xf32> to vector<2x32xf32>
    %248 = vector.extract_strided_slice %238 {offsets = [0, 96], sizes = [2, 32], strides = [1, 1]} : vector<2x128xf32> to vector<2x32xf32>
    %249 = math.tanh %248 : vector<2x32xf32>
    %c0_118 = arith.constant 0 : index
    %c0_119 = arith.constant 0 : index
    %250 = vector.load %arg8[%c0_118, %c0_119] : memref<2x32xf32, #tpu.memory_space<vmem>>, vector<2x32xf32>
    %251 = arith.mulf %246, %250 : vector<2x32xf32>
    %252 = arith.mulf %245, %249 : vector<2x32xf32>
    %253 = arith.addf %251, %252 : vector<2x32xf32>
    %254 = math.tanh %253 : vector<2x32xf32>
    %255 = arith.mulf %247, %254 : vector<2x32xf32>
    %c0_120 = arith.constant 0 : index
    %c0_121 = arith.constant 0 : index
    %256 = vector.load %arg8[%c0_120, %c0_121] : memref<2x32xf32, #tpu.memory_space<vmem>>, vector<2x32xf32>
    tpu.vector_store %arg8[%c0_120, %c0_121], %253 {strides = array<i32>} : memref<2x32xf32, #tpu.memory_space<vmem>>, vector<2x32xf32>,
    %c0_122 = arith.constant 0 : index
    %c0_123 = arith.constant 0 : index
    %257 = vector.load %arg7[%c0_122, %c0_123] : memref<2x32xf32, #tpu.memory_space<vmem>>, vector<2x32xf32>
    tpu.vector_store %arg7[%c0_122, %c0_123], %255 {strides = array<i32>} : memref<2x32xf32, #tpu.memory_space<vmem>>, vector<2x32xf32>,
    %258 = arith.index_cast %c7_i32 : i32 to index
    %c0_124 = arith.constant 0 : index
    %c0_125 = arith.constant 0 : index
    %259 = vector.load %arg6[%258, %c0_124, %c0_125] : memref<8x2x32xf32, #tpu.memory_space<vmem>>, vector<1x2x32xf32>
    %260 = vector.shape_cast %259 : vector<1x2x32xf32> to vector<2x32xf32>
    %261 = vector.shape_cast %255 : vector<2x32xf32> to vector<1x2x32xf32>
    tpu.vector_store %arg6[%258, %c0_124, %c0_125], %261 {strides = array<i32>} : memref<8x2x32xf32, #tpu.memory_space<vmem>>, vector<1x2x32xf32>,
    %c8_i32 = arith.constant 8 : i32
    return
  }
  func.func @transform_0(%arg0: i32, %arg1: i32) -> (i32, i32, i32) {
    %c0_i32 = arith.constant 0 : i32
    %c0_i32_0 = arith.constant 0 : i32
    return %arg1, %arg0, %c0_i32 : i32, i32, i32
  }
  func.func @transform_1(%arg0: i32, %arg1: i32) -> (i32, i32) {
    %c0_i32 = arith.constant 0 : i32
    %c0_i32_0 = arith.constant 0 : i32
    %c0_i32_1 = arith.constant 0 : i32
    return %c0_i32, %c0_i32_0 : i32, i32
  }
  func.func @transform_2(%arg0: i32, %arg1: i32) -> (i32, i32) {
    %c0_i32 = arith.constant 0 : i32
    %c0_i32_0 = arith.constant 0 : i32
    %c0_i32_1 = arith.constant 0 : i32
    return %c0_i32, %c0_i32_0 : i32, i32
  }
  func.func @transform_3(%arg0: i32, %arg1: i32) -> (i32, i32) {
    %c0_i32 = arith.constant 0 : i32
    %c0_i32_0 = arith.constant 0 : i32
    %c0_i32_1 = arith.constant 0 : i32
    return %c0_i32, %c0_i32_0 : i32, i32
  }
  func.func @transform_4(%arg0: i32, %arg1: i32) -> (i32, i32, i32) {
    %c0_i32 = arith.constant 0 : i32
    %c0_i32_0 = arith.constant 0 : i32
    return %arg1, %arg0, %c0_i32 : i32, i32, i32
  }
}

</mosaic_0001>

<bundles_post_ra>
// kernel: tpu_custom_call.1
= control target key start
LH: loop header
LB: loop body
LE: loop exit
PB: predicated region body
PF: predicated region fallthrough
CT: control target
= control target key end

     0   :  { %9 = vsyncpa [#allocation5], 0  ;;  %s2406_s0 = inlined_call_operand.hbm [shape: f32[8,2,32], index: 0, kind: input, shape index: {}]   ;;  %s2407_s1 = inlined_call_operand.hbm [shape: f32[32,128], index: 1, kind: input, shape index: {}]   ;;  %s2408_s2 = inlined_call_operand.hbm [shape: f32[32,128], index: 2, kind: input, shape index: {}]   ;;  %s2409_s3 = inlined_call_operand.vmem [shape: f32[1,128], index: 3, kind: input, shape index: {}]   ;;  %s2410_s4 = inlined_call_operand.hbm [shape: f32[8,2,32], index: 4, kind: output, shape index: {}]  }
   0x1   :  { %10 = vsyncpa [#allocation8], 0 }
   0x2   :  { %11 = vsyncpa [#allocation6], 0  ;;  %s2070_s15 = smov [#allocation7]  }
   0x3   :  { %s29_s16 = sshll.u32 %s2070_s15, 4  ;;  %s30_s16 = int_to_ptr.vmem [resolvable:$true] %s29_s16 }
   0x4   :  { %s1992_s17 = scalar_lea.vmem %s30_s16, 512  ;;  %p1997_p1 = scmp.lt.s32.totalorder %s30_s16, %s30_s16 }
   0x5   :  { %p1993_p0 = scmp.ne.s32.totalorder %s30_s16, %s1992_s17  ;;  %p1998_p2 = scmp.lt.s32.totalorder %s1992_s17, %s1992_s17 }
   0x7   :  { %p1999_p3 = por %p1998_p2, %p1997_p1 }
   0x9   :  { %p2000_p4 = pnand %p1999_p3, %p1993_p0 }
   0xb   :  { %2003 = shalt.err (!%p2000_p4)
}
   0xc   :  { %s2071_s18 = smov 128   ;;  %s2072_s19 = smov 8  }
   0xd   :  { %35 = dma.hbm_to_vmem [thread:$0]  %s2407_s1, 512, %s30_s16, [#allocation8], %s2071_s18, %s2071_s18, %s2072_s19  }
   0xe   :  { %s2073_s22 = smov [#allocation4]  }
   0xf   :  { %s17_s23 = sshll.u32 %s2073_s22, 4  ;;  %s18_s23 = int_to_ptr.vmem [resolvable:$true] %s17_s23 }
  0x10   :  { %s2012_s24 = scalar_lea.vmem %s18_s23, 256  ;;  %p2017_p6 = scmp.lt.s32.totalorder %s18_s23, %s18_s23 }
  0x11   :  { %p2013_p5 = scmp.ne.s32.totalorder %s18_s23, %s2012_s24  ;;  %p2018_p7 = scmp.lt.s32.totalorder %s2012_s24, %s2012_s24 }
  0x13   :  { %p2019_p8 = por %p2018_p7, %p2017_p6 }
  0x15   :  { %p2020_p9 = pnand %p2019_p8, %p2013_p5 }
  0x17   :  { %2023 = shalt.err (!%p2020_p9)
}
  0x18   :  { %s2074_s25 = smov 32   ;;  %s2075_s26 = smov 2  }
  0x19   :  { %23 = dma.hbm_to_vmem [thread:$0]  %s2406_s0, 256, %s18_s23, [#allocation5], %s2074_s25, %s2074_s25, %s2075_s26  }
  0x1a   :  { %s2076_s1 = smov [#allocation9]  }
  0x1b   :  { %s41_s29 = sshll.u32 %s2076_s1, 4  ;;  %s42_s29 = int_to_ptr.vmem [resolvable:$true] %s41_s29 }
  0x1c   :  { %s2032_s30 = scalar_lea.vmem %s42_s29, 512  ;;  %p2037_p11 = scmp.lt.s32.totalorder %s42_s29, %s42_s29 }
  0x1d   :  { %p2033_p10 = scmp.ne.s32.totalorder %s42_s29, %s2032_s30  ;;  %p2038_p12 = scmp.lt.s32.totalorder %s2032_s30, %s2032_s30 }
  0x1f   :  { %p2039_p13 = por %p2038_p12, %p2037_p11 }
  0x21   :  { %p2040_p0 = pnand %p2039_p13, %p2033_p10 }
  0x23   :  { %2043 = shalt.err (!%p2040_p0)
}
  0x24   :  { %47 = dma.hbm_to_vmem [thread:$0]  %s2408_s2, 512, %s42_s29, [#allocation8], %s2071_s18, %s2071_s18, %s2072_s19  }
  0x25   :  { %2064 = dma.done.wait [#allocation5], 256  }
  0x26   :  { %2065 = vsyncadd [#allocation5], 4294967040 }
  0x27   :  { %2066 = dma.done.wait [#allocation8], 1024  }
  0x28   :  { %2067 = vsyncadd [#allocation8], 4294966272  ;;  %vm63_vm0 = vcmask 254976   ;;  %v2077_v0 = vmov 0.0   ;;  %vm2078_vm1 = vmmov 0   ;;  %v2129_v1 = vld [vmem:[#allocation9 + $0x18] sm:$0xff] }
  0x29   :  { %1732 = vmatprep.subr.mxu0 %v2077_v0  ;;  %1743 = vmatprep.subr.mxu1 %v2077_v0  ;;  %64 = vst.msk [vmem:[#allocation2] sm:$0x3] %vm63_vm0, %v2077_v0  ;;  %65 = vst.msk [vmem:[#allocation3] sm:$0x3] %vm63_vm0, %v2077_v0  ;;  %v2131_v2 = vld [vmem:[#allocation7 + $0x18] sm:$0xff]  ;;  %v2133_v3 = vld [vmem:[#allocation9 + $0x10] sm:$0xff] }
  0x2a   :  { %1740 = vmatprep.mubr.msk.f32.mxu0 %vm2078_vm1, %v2077_v0  ;;  %1751 = vmatprep.mubr.msk.f32.mxu1 %vm2078_vm1, %v2077_v0  ;;  %v2137_v4 = vld [vmem:[#allocation7 + $0x10] sm:$0xff]  ;;  %v2141_v5 = vld [vmem:[#allocation9 + $0x8] sm:$0xff]  ;;  %v2149_v7 = vld [vmem:[#allocation9] sm:$0xff]  ;;  %vm77_vm2 = vcmask 261120   ;;  %s2080_s7 = smov 64   ;;  %s2081_s8 = smov [#allocation10]  }
  0x2b   :  { %1733 = vmatpush3.msra.mxu0 %v2129_v1  ;;  %1744 = vmatpush3.msra.mxu1 %v2131_v2  ;;  %v2143_v6 = vld [vmem:[#allocation7 + $0x8] sm:$0xff]  ;;  %v2151_v8 = vld [vmem:[#allocation7] sm:$0xff]  ;;  %v75_v10 = vld [vmem:[#allocation4] sm:$0x3]  ;;  %s1614_s9 = sshll.u32 %s2081_s8, 4  ;;  %s1615_s9 = int_to_ptr.vmem [resolvable:$true] %s1614_s9 }
  0x2c   :  { %1734 = vmatprep.subr.mxu0 %v2077_v0  ;;  %1745 = vmatprep.subr.mxu1 %v2077_v0  ;;  %v2186_v12 = vld [vmem:[%s2409_s3] ss:$0 sm:$0xff]  ;;  %s2079_s3 = smov 96   ;;  %v273_v31 = vld [vmem:[#allocation4 + $0x2] sm:$0x3]  ;;  %s2044_s10 = scalar_lea.vmem %s1615_s9, 256 }
  0x2d   :  { %1735 = vmatpush3.msra.mxu0 %v2133_v3  ;;  %1746 = vmatpush3.msra.mxu1 %v2137_v4  ;;  %v464_v56 = vld [vmem:[#allocation4 + $0x4] sm:$0x3]  ;;  %p2045_p1 = scmp.ne.s32.totalorder %s1615_s9, %s2044_s10  ;;  %p2049_p2 = scmp.lt.s32.totalorder %s1615_s9, %s1615_s9 }
  0x2e   :  { %1736 = vmatprep.subr.mxu0 %v2077_v0  ;;  %1747 = vmatprep.subr.mxu1 %v2077_v0  ;;  %p2050_p3 = scmp.lt.s32.totalorder %s2044_s10, %s2044_s10 }
  0x2f   :  { %1737 = vmatpush3.msra.mxu0 %v2141_v5  ;;  %1748 = vmatpush3.msra.mxu1 %v2143_v6 }
  0x30   :  { %v76_v9 = vld [vmem:[#allocation2] sm:$0x3]  ;;  %1738 = vmatprep.subr.mxu0 %v2077_v0  ;;  %1749 = vmatprep.subr.mxu1 %v2077_v0  ;;  %v238_v19 = vld [vmem:[#allocation3] sm:$0x3]  ;;  %p2051_p4 = por %p2050_p3, %p2049_p2 }
  0x31   :  { %1739 = vmatpush3.msra.mxu0 %v2149_v7  ;;  %1750 = vmatpush3.msra.mxu1 %v2151_v8 }
  0x32   :  { %1741 = vmatmul.mubr.msk.f32.vlgmr.msra.gmra.mxu0 %vm77_vm2, %v76_v9  ;;  %1752 = vmatmul.mubr.msk.f32.vlgmr.msra.gmra.mxu1 %vm77_vm2, %v75_v10  ;;  %p2052_p5 = pnand %p2051_p4, %p2045_p1 }
  0x33   :  { %1765 = vmatprep.subr.mxu1 %v2077_v0  ;;  %1754 = vmatprep.subr.mxu0 %v2077_v0 }
  0x34   :  { %1766 = vmatpush3.msra.mxu1 %v2131_v2  ;;  %1755 = vmatpush3.msra.mxu0 %v2129_v1 }
  0x35   :  { %1767 = vmatprep.subr.mxu1 %v2077_v0  ;;  %1756 = vmatprep.subr.mxu0 %v2077_v0 }
  0x36   :  { %1768 = vmatpush3.msra.mxu1 %v2137_v4  ;;  %1757 = vmatpush3.msra.mxu0 %v2133_v3 }
  0x37   :  { %1769 = vmatprep.subr.mxu1 %v2077_v0  ;;  %1758 = vmatprep.subr.mxu0 %v2077_v0 }
  0x38   :  { %1770 = vmatpush3.msra.mxu1 %v2143_v6  ;;  %1759 = vmatpush3.msra.mxu0 %v2141_v5 }
  0x39   :  { %1771 = vmatprep.subr.mxu1 %v2077_v0  ;;  %1773 = vmatprep.mubr.msk.f32.mxu1 %vm2078_vm1, %v2077_v0 }
  0x3a   :  { %1772 = vmatpush3.msra.mxu1 %v2151_v8  ;;  %1760 = vmatprep.subr.mxu0 %v2077_v0 }
  0x3b   :  { %1761 = vmatpush3.msra.mxu0 %v2149_v7  ;;  %1762 = vmatprep.mubr.msk.f32.mxu0 %vm2078_vm1, %v2077_v0 }
  0x3c   :  { %1787 = vmatprep.subr.mxu1 %v2077_v0  ;;  %1776 = vmatprep.subr.mxu0 %v2077_v0 }
  0x3d   :  { %1774 = vmatmul.mubr.msk.f32.vlgmr.msra.gmra.mxu1 %vm77_vm2, %v273_v31 }
  0x3e   :  { %1788 = vmatpush3.msra.mxu1 %v2131_v2  ;;  %1795 = vmatprep.mubr.msk.f32.mxu1 %vm2078_vm1, %v2077_v0 }
  0x3f   :  { %1789 = vmatprep.subr.mxu1 %v2077_v0 }
  0x40   :  { %1790 = vmatpush3.msra.mxu1 %v2137_v4 }
  0x41   :  { %1791 = vmatprep.subr.mxu1 %v2077_v0 }
  0x42   :  { %1792 = vmatpush3.msra.mxu1 %v2143_v6 }
  0x43   :  { %1793 = vmatprep.subr.mxu1 %v2077_v0 }
  0x44   :  { %1794 = vmatpush3.msra.mxu1 %v2151_v8 }
  0x45   :  { %1809 = vmatprep.subr.mxu1 %v2077_v0  ;;  %1796 = vmatmul.mubr.msk.f32.vlgmr.msra.gmra.mxu1 %vm77_vm2, %v464_v56 }
  0x46   :  { %1810 = vmatpush3.msra.mxu1 %v2131_v2  ;;  %1817 = vmatprep.mubr.msk.f32.mxu1 %vm2078_vm1, %v2077_v0 }
  0x47   :  { %1811 = vmatprep.subr.mxu1 %v2077_v0 }
  0x48   :  { %1812 = vmatpush3.msra.mxu1 %v2137_v4 }
  0x49   :  { %1813 = vmatprep.subr.mxu1 %v2077_v0 }
  0x4a   :  { %1814 = vmatpush3.msra.mxu1 %v2143_v6 }
  0x4b   :  { %1815 = vmatprep.subr.mxu1 %v2077_v0 }
  0x4c   :  { %1816 = vmatpush3.msra.mxu1 %v2151_v8 }
  0x4d   :  { %1831 = vmatprep.subr.mxu1 %v2077_v0 }
  0xf2   :  { %v147_v11 = vpop.f32.mrf.mxu0  ;;  %v220_v13 = vpop.f32.mrf.mxu1 }
  0xf3   :  { %v221_v14 = vadd.f32 %v220_v13, %v147_v11 }
  0xf4   :  { %v1742_v15 = vpop.f32.mrf.mxu0  ;;  %v1753_v16 = vpop.f32.mrf.mxu1 }
  0xf5   :  { %v230_v17 = vadd.f32 %v2186_v12, %v221_v14 }
  0xf7   :  { %1920 = vtanh.f32 %v230_v17  ;;  %v1630_v20 = vmul.f32 -1.442695, %v230_v17 }
  0xf9   :  { %1922 = vpow2.f32 %v1630_v20 }
  0xfd   :  { %v417_v38 = vpop.f32.mrf.mxu1 }
  0xff   :  { %v1775_v39 = vpop.f32.mrf.mxu1 }
 0x104   :  { %v1921_v18 = vpop.eup %1920 }
 0x105   :  { %245 = vrot.lane.b32.xlu0 %v1921_v18, %s2074_s25  ;;  %v608_v63 = vpop.f32.mrf.mxu1 }
 0x106   :  { %v1923_v21 = vpop.eup %1922 }
 0x107   :  { %v234_v22 = vadd.f32 1.0, %v1923_v21  ;;  %v1797_v9 = vpop.f32.mrf.mxu1 }
 0x109   :  { %240 = vrot.lane.b32.xlu0 %v238_v19, %s2074_s25  ;;  %1924 = vrcp.f32 %v234_v22 }
 0x116   :  { %v1925_v23 = vpop.eup %1924 }
 0x177   :  { %v246_v24 = vpop.permute.xlu0 %245 }
 0x178   :  { %v248_v25 = vmul.f32 %v1925_v23, %v246_v24 }
 0x17a   :  { %250 = vrot.lane.b32.xlu1 %v248_v25, %s2074_s25 }
 0x17b   :  { %v241_v26 = vpop.permute.xlu0 %240 }
 0x17c   :  { %v243_v27 = vmul.f32 %v1925_v23, %v241_v26 }
 0x1ec   :  { %v251_v28 = vpop.permute.xlu1 %250 }
 0x1ed   :  { %v253_v29 = vadd.f32 %v251_v28, %v243_v27  ;;  %v655_v27 = vld [vmem:[#allocation4 + $0x6] sm:$0x3] }
 0x1ee   :  { %1818 = vmatmul.mubr.msk.f32.vlgmr.msra.gmra.mxu1 %vm77_vm2, %v655_v27 }
 0x1ef   :  { %1926 = vtanh.f32 %v253_v29  ;;  %1832 = vmatpush3.msra.mxu1 %v2131_v2  ;;  %1839 = vmatprep.mubr.msk.f32.mxu1 %vm2078_vm1, %v2077_v0 }
 0x1f0   :  { %1833 = vmatprep.subr.mxu1 %v2077_v0 }
 0x1f1   :  { %1834 = vmatpush3.msra.mxu1 %v2137_v4 }
 0x1f2   :  { %1835 = vmatprep.subr.mxu1 %v2077_v0 }
 0x1f3   :  { %1836 = vmatpush3.msra.mxu1 %v2143_v6 }
 0x1f4   :  { %1837 = vmatprep.subr.mxu1 %v2077_v0 }
 0x1f5   :  { %1838 = vmatpush3.msra.mxu1 %v2151_v8 }
 0x1f6   :  { %1853 = vmatprep.subr.mxu1 %v2077_v0 }
 0x1fc   :  { %v1927_v30 = vpop.eup %1926 }
 0x1fd   :  { %256 = vrot.lane.b32.xlu1 %v1927_v30, %s2074_s25 }
 0x201   :  { %261 = vrot.lane.b32.xlu1 %v253_v29, %s2079_s3 }
 0x26f   :  { %v257_v32 = vpop.permute.xlu1 %256 }
 0x270   :  { %v259_v33 = vmul.f32 %v1925_v23, %v257_v32 }
 0x272   :  { %267 = vrot.lane.b32.xlu0 %v259_v33, %s2080_s7 }
 0x273   :  { %v262_v34 = vpop.permute.xlu1 %261 }
 0x274   :  { %265 = vst.msk [vmem:[#allocation3] sm:$0x3] %vm63_vm0, %v262_v34 }
 0x27b   :  { %v429_v35 = vld [vmem:[#allocation3] sm:$0x3] }
 0x27c   :  { %431 = vrot.lane.b32.xlu1 %v429_v35, %s2074_s25 }
 0x2ae   :  { %v799_v34 = vpop.f32.mrf.mxu1 }
 0x2b0   :  { %v1819_v35 = vpop.f32.mrf.mxu1 }
 0x2e4   :  { %v268_v36 = vpop.permute.xlu0 %267 }
 0x2e5   :  { %270 = vst.msk [vmem:[#allocation2] sm:$0x3] %vm63_vm0, %v268_v36  ;;  %271 = vst.msk [vmem:[#allocation10] sm:$0x3] %vm63_vm0, %v268_v36 }
 0x2ec   :  { %v274_v37 = vld [vmem:[#allocation2] sm:$0x3] }
 0x2ed   :  { %1763 = vmatmul.mubr.msk.f32.vlgmr.msra.gmra.mxu0 %vm77_vm2, %v274_v37 }
 0x2ee   :  { %1777 = vmatpush3.msra.mxu0 %v2129_v1  ;;  %1784 = vmatprep.mubr.msk.f32.mxu0 %vm2078_vm1, %v2077_v0  ;;  %v432_v51 = vpop.permute.xlu1 %431 }
 0x2ef   :  { %1778 = vmatprep.subr.mxu0 %v2077_v0 }
 0x2f0   :  { %1779 = vmatpush3.msra.mxu0 %v2133_v3 }
 0x2f1   :  { %1780 = vmatprep.subr.mxu0 %v2077_v0 }
 0x2f2   :  { %1781 = vmatpush3.msra.mxu0 %v2141_v5 }
 0x2f3   :  { %1782 = vmatprep.subr.mxu0 %v2077_v0 }
 0x2f4   :  { %1783 = vmatpush3.msra.mxu0 %v2149_v7 }
 0x2f5   :  { %1798 = vmatprep.subr.mxu0 %v2077_v0 }
 0x3ad   :  { %v344_v40 = vpop.f32.mrf.mxu0 }
 0x3ae   :  { %v418_v41 = vadd.f32 %v417_v38, %v344_v40 }
 0x3af   :  { %v1764_v42 = vpop.f32.mrf.mxu0 }
 0x3b0   :  { %v421_v43 = vadd.f32 %v2186_v12, %v418_v41 }
 0x3b2   :  { %1928 = vtanh.f32 %v421_v43  ;;  %v1633_v45 = vmul.f32 -1.442695, %v421_v43 }
 0x3b4   :  { %1930 = vpow2.f32 %v1633_v45 }
 0x3bf   :  { %v1929_v44 = vpop.eup %1928 }
 0x3c0   :  { %436 = vrot.lane.b32.xlu0 %v1929_v44, %s2074_s25 }
 0x3c1   :  { %v1931_v46 = vpop.eup %1930 }
 0x3c2   :  { %v425_v47 = vadd.f32 1.0, %v1931_v46 }
 0x3c4   :  { %1932 = vrcp.f32 %v425_v47 }
 0x3d1   :  { %v1933_v48 = vpop.eup %1932 }
 0x3d2   :  { %v434_v52 = vmul.f32 %v1933_v48, %v432_v51 }
 0x432   :  { %v437_v49 = vpop.permute.xlu0 %436 }
 0x433   :  { %v439_v50 = vmul.f32 %v1933_v48, %v437_v49 }
 0x435   :  { %441 = vrot.lane.b32.xlu0 %v439_v50, %s2074_s25 }
 0x4a7   :  { %v442_v53 = vpop.permute.xlu0 %441 }
 0x4a8   :  { %v444_v54 = vadd.f32 %v442_v53, %v434_v52  ;;  %v846_v52 = vld [vmem:[#allocation4 + $0x8] sm:$0x3] }
 0x4a9   :  { %1840 = vmatmul.mubr.msk.f32.vlgmr.msra.gmra.mxu1 %vm77_vm2, %v846_v52 }
 0x4aa   :  { %1934 = vtanh.f32 %v444_v54  ;;  %1854 = vmatpush3.msra.mxu1 %v2131_v2  ;;  %1861 = vmatprep.mubr.msk.f32.mxu1 %vm2078_vm1, %v2077_v0 }
 0x4ab   :  { %1855 = vmatprep.subr.mxu1 %v2077_v0 }
 0x4ac   :  { %1856 = vmatpush3.msra.mxu1 %v2137_v4 }
 0x4ad   :  { %1857 = vmatprep.subr.mxu1 %v2077_v0 }
 0x4ae   :  { %1858 = vmatpush3.msra.mxu1 %v2143_v6 }
 0x4af   :  { %1859 = vmatprep.subr.mxu1 %v2077_v0 }
 0x4b0   :  { %1860 = vmatpush3.msra.mxu1 %v2151_v8 }
 0x4b1   :  { %1875 = vmatprep.subr.mxu1 %v2077_v0 }
 0x4b7   :  { %v1935_v55 = vpop.eup %1934 }
 0x4b8   :  { %447 = vrot.lane.b32.xlu1 %v1935_v55, %s2074_s25 }
 0x4bc   :  { %452 = vrot.lane.b32.xlu1 %v444_v54, %s2079_s3 }
 0x52a   :  { %v448_v57 = vpop.permute.xlu1 %447 }
 0x52b   :  { %v450_v58 = vmul.f32 %v1933_v48, %v448_v57 }
 0x52d   :  { %457 = vrot.lane.b32.xlu0 %v450_v58, %s2080_s7 }
 0x52e   :  { %v453_v59 = vpop.permute.xlu1 %452 }
 0x52f   :  { %455 = vst.msk [vmem:[#allocation3] sm:$0x3] %vm63_vm0, %v453_v59 }
 0x536   :  { %v620_v60 = vld [vmem:[#allocation3] sm:$0x3] }
 0x537   :  { %622 = vrot.lane.b32.xlu1 %v620_v60, %s2074_s25 }
 0x569   :  { %v990_v59 = vpop.f32.mrf.mxu1 }
 0x56b   :  { %v1841_v60 = vpop.f32.mrf.mxu1 }
 0x59f   :  { %v458_v61 = vpop.permute.xlu0 %457 }
 0x5a0   :  { %460 = vst.msk [vmem:[#allocation2] sm:$0x3] %vm63_vm0, %v458_v61  ;;  %462 = vst.msk [vmem:[#allocation10 + $0x2] sm:$0x3] %vm63_vm0, %v458_v61 }
 0x5a7   :  { %v465_v62 = vld [vmem:[#allocation2] sm:$0x3] }
 0x5a8   :  { %1785 = vmatmul.mubr.msk.f32.vlgmr.msra.gmra.mxu0 %vm77_vm2, %v465_v62 }
 0x5a9   :  { %1799 = vmatpush3.msra.mxu0 %v2129_v1  ;;  %1806 = vmatprep.mubr.msk.f32.mxu0 %vm2078_vm1, %v2077_v0  ;;  %v623_v22 = vpop.permute.xlu1 %622 }
 0x5aa   :  { %1800 = vmatprep.subr.mxu0 %v2077_v0 }
 0x5ab   :  { %1801 = vmatpush3.msra.mxu0 %v2133_v3 }
 0x5ac   :  { %1802 = vmatprep.subr.mxu0 %v2077_v0 }
 0x5ad   :  { %1803 = vmatpush3.msra.mxu0 %v2141_v5 }
 0x5ae   :  { %1804 = vmatprep.subr.mxu0 %v2077_v0 }
 0x5af   :  { %1805 = vmatpush3.msra.mxu0 %v2149_v7 }
 0x5b0   :  { %1820 = vmatprep.subr.mxu0 %v2077_v0 }
 0x668   :  { %v535_v10 = vpop.f32.mrf.mxu0 }
 0x669   :  { %v609_v11 = vadd.f32 %v608_v63, %v535_v10 }
 0x66a   :  { %v1786_v13 = vpop.f32.mrf.mxu0 }
 0x66b   :  { %v612_v14 = vadd.f32 %v2186_v12, %v609_v11 }
 0x66d   :  { %1936 = vtanh.f32 %v612_v14  ;;  %v1636_v16 = vmul.f32 -1.442695, %v612_v14 }
 0x66f   :  { %1938 = vpow2.f32 %v1636_v16 }
 0x67a   :  { %v1937_v15 = vpop.eup %1936 }
 0x67b   :  { %627 = vrot.lane.b32.xlu0 %v1937_v15, %s2074_s25 }
 0x67c   :  { %v1939_v17 = vpop.eup %1938 }
 0x67d   :  { %v616_v18 = vadd.f32 1.0, %v1939_v17 }
 0x67f   :  { %1940 = vrcp.f32 %v616_v18 }
 0x68c   :  { %v1941_v19 = vpop.eup %1940 }
 0x68d   :  { %v625_v23 = vmul.f32 %v1941_v19, %v623_v22 }
 0x6ed   :  { %v628_v20 = vpop.permute.xlu0 %627 }
 0x6ee   :  { %v630_v21 = vmul.f32 %v1941_v19, %v628_v20 }
 0x6f0   :  { %632 = vrot.lane.b32.xlu0 %v630_v21, %s2074_s25 }
 0x762   :  { %v633_v24 = vpop.permute.xlu0 %632 }
 0x763   :  { %v635_v25 = vadd.f32 %v633_v24, %v625_v23  ;;  %v1037_v23 = vld [vmem:[#allocation4 + $0xa] sm:$0x3] }
 0x764   :  { %1862 = vmatmul.mubr.msk.f32.vlgmr.msra.gmra.mxu1 %vm77_vm2, %v1037_v23 }
 0x765   :  { %1942 = vtanh.f32 %v635_v25  ;;  %1876 = vmatpush3.msra.mxu1 %v2131_v2  ;;  %1883 = vmatprep.mubr.msk.f32.mxu1 %vm2078_vm1, %v2077_v0 }
 0x766   :  { %1877 = vmatprep.subr.mxu1 %v2077_v0 }
 0x767   :  { %1878 = vmatpush3.msra.mxu1 %v2137_v4 }
 0x768   :  { %1879 = vmatprep.subr.mxu1 %v2077_v0 }
 0x769   :  { %1880 = vmatpush3.msra.mxu1 %v2143_v6 }
 0x76a   :  { %1881 = vmatprep.subr.mxu1 %v2077_v0 }
 0x76b   :  { %1882 = vmatpush3.msra.mxu1 %v2151_v8 }
 0x76c   :  { %1897 = vmatprep.subr.mxu1 %v2077_v0 }
 0x772   :  { %v1943_v26 = vpop.eup %1942 }
 0x773   :  { %638 = vrot.lane.b32.xlu1 %v1943_v26, %s2074_s25 }
 0x777   :  { %643 = vrot.lane.b32.xlu1 %v635_v25, %s2079_s3 }
 0x7e5   :  { %v639_v28 = vpop.permute.xlu1 %638 }
 0x7e6   :  { %v641_v29 = vmul.f32 %v1941_v19, %v639_v28 }
 0x7e8   :  { %648 = vrot.lane.b32.xlu0 %v641_v29, %s2080_s7 }
 0x7e9   :  { %v644_v30 = vpop.permute.xlu1 %643 }
 0x7ea   :  { %646 = vst.msk [vmem:[#allocation3] sm:$0x3] %vm63_vm0, %v644_v30 }
 0x7f1   :  { %v811_v31 = vld [vmem:[#allocation3] sm:$0x3] }
 0x7f2   :  { %813 = vrot.lane.b32.xlu1 %v811_v31, %s2074_s25 }
 0x824   :  { %v1181_v30 = vpop.f32.mrf.mxu1 }
 0x826   :  { %v1863_v31 = vpop.f32.mrf.mxu1 }
 0x85a   :  { %v649_v32 = vpop.permute.xlu0 %648 }
 0x85b   :  { %651 = vst.msk [vmem:[#allocation2] sm:$0x3] %vm63_vm0, %v649_v32  ;;  %653 = vst.msk [vmem:[#allocation10 + $0x4] sm:$0x3] %vm63_vm0, %v649_v32 }
 0x862   :  { %v656_v33 = vld [vmem:[#allocation2] sm:$0x3] }
 0x863   :  { %1807 = vmatmul.mubr.msk.f32.vlgmr.msra.gmra.mxu0 %vm77_vm2, %v656_v33 }
 0x864   :  { %1821 = vmatpush3.msra.mxu0 %v2129_v1  ;;  %1828 = vmatprep.mubr.msk.f32.mxu0 %vm2078_vm1, %v2077_v0  ;;  %v814_v47 = vpop.permute.xlu1 %813 }
 0x865   :  { %1822 = vmatprep.subr.mxu0 %v2077_v0 }
 0x866   :  { %1823 = vmatpush3.msra.mxu0 %v2133_v3 }
 0x867   :  { %1824 = vmatprep.subr.mxu0 %v2077_v0 }
 0x868   :  { %1825 = vmatpush3.msra.mxu0 %v2141_v5 }
 0x869   :  { %1826 = vmatprep.subr.mxu0 %v2077_v0 }
 0x86a   :  { %1827 = vmatpush3.msra.mxu0 %v2149_v7 }
 0x86b   :  { %1842 = vmatprep.subr.mxu0 %v2077_v0 }
 0x923   :  { %v726_v36 = vpop.f32.mrf.mxu0 }
 0x924   :  { %v800_v37 = vadd.f32 %v799_v34, %v726_v36 }
 0x925   :  { %v1808_v38 = vpop.f32.mrf.mxu0 }
 0x926   :  { %v803_v39 = vadd.f32 %v2186_v12, %v800_v37 }
 0x928   :  { %1944 = vtanh.f32 %v803_v39  ;;  %v1639_v41 = vmul.f32 -1.442695, %v803_v39 }
 0x92a   :  { %1946 = vpow2.f32 %v1639_v41 }
 0x935   :  { %v1945_v40 = vpop.eup %1944 }
 0x936   :  { %818 = vrot.lane.b32.xlu0 %v1945_v40, %s2074_s25 }
 0x937   :  { %v1947_v42 = vpop.eup %1946 }
 0x938   :  { %v807_v43 = vadd.f32 1.0, %v1947_v42 }
 0x93a   :  { %1948 = vrcp.f32 %v807_v43 }
 0x947   :  { %v1949_v44 = vpop.eup %1948 }
 0x948   :  { %v816_v48 = vmul.f32 %v1949_v44, %v814_v47 }
 0x9a8   :  { %v819_v45 = vpop.permute.xlu0 %818 }
 0x9a9   :  { %v821_v46 = vmul.f32 %v1949_v44, %v819_v45 }
 0x9ab   :  { %823 = vrot.lane.b32.xlu0 %v821_v46, %s2074_s25 }
 0xa1d   :  { %v824_v49 = vpop.permute.xlu0 %823 }
 0xa1e   :  { %v826_v50 = vadd.f32 %v824_v49, %v816_v48  ;;  %v1228_v48 = vld [vmem:[#allocation4 + $0xc] sm:$0x3] }
 0xa1f   :  { %1884 = vmatmul.mubr.msk.f32.vlgmr.msra.gmra.mxu1 %vm77_vm2, %v1228_v48 }
 0xa20   :  { %1950 = vtanh.f32 %v826_v50  ;;  %1898 = vmatpush3.msra.mxu1 %v2131_v2  ;;  %1905 = vmatprep.mubr.msk.f32.mxu1 %vm2078_vm1, %v2077_v0 }
 0xa21   :  { %1899 = vmatprep.subr.mxu1 %v2077_v0 }
 0xa22   :  { %1900 = vmatpush3.msra.mxu1 %v2137_v4 }
 0xa23   :  { %1901 = vmatprep.subr.mxu1 %v2077_v0 }
 0xa24   :  { %1902 = vmatpush3.msra.mxu1 %v2143_v6 }
 0xa25   :  { %1903 = vmatprep.subr.mxu1 %v2077_v0 }
 0xa26   :  { %1904 = vmatpush3.msra.mxu1 %v2151_v8 }
 0xa2d   :  { %v1951_v51 = vpop.eup %1950 }
 0xa2e   :  { %829 = vrot.lane.b32.xlu1 %v1951_v51, %s2074_s25 }
 0xa32   :  { %834 = vrot.lane.b32.xlu1 %v826_v50, %s2079_s3 }
 0xaa0   :  { %v830_v53 = vpop.permute.xlu1 %829 }
 0xaa1   :  { %v832_v54 = vmul.f32 %v1949_v44, %v830_v53 }
 0xaa3   :  { %839 = vrot.lane.b32.xlu0 %v832_v54, %s2080_s7 }
 0xaa4   :  { %v835_v55 = vpop.permute.xlu1 %834 }
 0xaa5   :  { %837 = vst.msk [vmem:[#allocation3] sm:$0x3] %vm63_vm0, %v835_v55 }
 0xaac   :  { %v1002_v56 = vld [vmem:[#allocation3] sm:$0x3] }
 0xaad   :  { %1004 = vrot.lane.b32.xlu1 %v1002_v56, %s2074_s25 }
 0xadf   :  { %v1372_v6 = vpop.f32.mrf.mxu1 }
 0xae1   :  { %v1885_v8 = vpop.f32.mrf.mxu1 }
 0xb15   :  { %v840_v57 = vpop.permute.xlu0 %839 }
 0xb16   :  { %842 = vst.msk [vmem:[#allocation2] sm:$0x3] %vm63_vm0, %v840_v57  ;;  %844 = vst.msk [vmem:[#allocation10 + $0x6] sm:$0x3] %vm63_vm0, %v840_v57 }
 0xb1d   :  { %v847_v58 = vld [vmem:[#allocation2] sm:$0x3] }
 0xb1e   :  { %1829 = vmatmul.mubr.msk.f32.vlgmr.msra.gmra.mxu0 %vm77_vm2, %v847_v58 }
 0xb1f   :  { %1843 = vmatpush3.msra.mxu0 %v2129_v1  ;;  %1850 = vmatprep.mubr.msk.f32.mxu0 %vm2078_vm1, %v2077_v0  ;;  %v1005_v18 = vpop.permute.xlu1 %1004 }
 0xb20   :  { %1844 = vmatprep.subr.mxu0 %v2077_v0 }
 0xb21   :  { %1845 = vmatpush3.msra.mxu0 %v2133_v3 }
 0xb22   :  { %1846 = vmatprep.subr.mxu0 %v2077_v0 }
 0xb23   :  { %1847 = vmatpush3.msra.mxu0 %v2141_v5 }
 0xb24   :  { %1848 = vmatprep.subr.mxu0 %v2077_v0 }
 0xb25   :  { %1849 = vmatpush3.msra.mxu0 %v2149_v7 }
 0xb26   :  { %1864 = vmatprep.subr.mxu0 %v2077_v0 }
 0xbde   :  { %v917_v61 = vpop.f32.mrf.mxu0 }
 0xbdf   :  { %v991_v62 = vadd.f32 %v990_v59, %v917_v61 }
 0xbe0   :  { %v1830_v63 = vpop.f32.mrf.mxu0 }
 0xbe1   :  { %v994_v9 = vadd.f32 %v2186_v12, %v991_v62 }
 0xbe3   :  { %1952 = vtanh.f32 %v994_v9  ;;  %v1642_v11 = vmul.f32 -1.442695, %v994_v9  ;;  %v1419_v9 = vld [vmem:[#allocation4 + $0xe] sm:$0x3] }
 0xbe4   :  { %1906 = vmatmul.mubr.msk.f32.vlgmr.msra.gmra.mxu1 %vm77_vm2, %v1419_v9 }
 0xbe5   :  { %1954 = vpow2.f32 %v1642_v11 }
 0xbf0   :  { %v1953_v10 = vpop.eup %1952 }
 0xbf1   :  { %1009 = vrot.lane.b32.xlu0 %v1953_v10, %s2074_s25 }
 0xbf2   :  { %v1955_v13 = vpop.eup %1954 }
 0xbf3   :  { %v998_v14 = vadd.f32 1.0, %v1955_v13 }
 0xbf5   :  { %1956 = vrcp.f32 %v998_v14 }
 0xc02   :  { %v1957_v15 = vpop.eup %1956 }
 0xc03   :  { %v1007_v19 = vmul.f32 %v1957_v15, %v1005_v18 }
 0xc63   :  { %v1010_v16 = vpop.permute.xlu0 %1009 }
 0xc64   :  { %v1012_v17 = vmul.f32 %v1957_v15, %v1010_v16 }
 0xc66   :  { %1014 = vrot.lane.b32.xlu0 %v1012_v17, %s2074_s25 }
 0xca4   :  { %v1563_v17 = vpop.f32.mrf.mxu1 }
 0xca6   :  { %v1907_v18 = vpop.f32.mrf.mxu1 }
 0xcd8   :  { %v1015_v20 = vpop.permute.xlu0 %1014 }
 0xcd9   :  { %v1017_v21 = vadd.f32 %v1015_v20, %v1007_v19 }
 0xcdb   :  { %1958 = vtanh.f32 %v1017_v21 }
 0xce8   :  { %v1959_v22 = vpop.eup %1958 }
 0xce9   :  { %1020 = vrot.lane.b32.xlu1 %v1959_v22, %s2074_s25 }
 0xced   :  { %1025 = vrot.lane.b32.xlu1 %v1017_v21, %s2079_s3 }
 0xd5b   :  { %v1021_v24 = vpop.permute.xlu1 %1020 }
 0xd5c   :  { %v1023_v25 = vmul.f32 %v1957_v15, %v1021_v24 }
 0xd5e   :  { %1030 = vrot.lane.b32.xlu0 %v1023_v25, %s2080_s7 }
 0xd5f   :  { %v1026_v26 = vpop.permute.xlu1 %1025 }
 0xd60   :  { %1028 = vst.msk [vmem:[#allocation3] sm:$0x3] %vm63_vm0, %v1026_v26 }
 0xd67   :  { %v1193_v27 = vld [vmem:[#allocation3] sm:$0x3] }
 0xd68   :  { %1195 = vrot.lane.b32.xlu1 %v1193_v27, %s2074_s25 }
 0xdd0   :  { %v1031_v28 = vpop.permute.xlu0 %1030 }
 0xdd1   :  { %1033 = vst.msk [vmem:[#allocation2] sm:$0x3] %vm63_vm0, %v1031_v28  ;;  %1035 = vst.msk [vmem:[#allocation10 + $0x8] sm:$0x3] %vm63_vm0, %v1031_v28 }
 0xdd8   :  { %v1038_v29 = vld [vmem:[#allocation2] sm:$0x3] }
 0xdd9   :  { %1851 = vmatmul.mubr.msk.f32.vlgmr.msra.gmra.mxu0 %vm77_vm2, %v1038_v29 }
 0xdda   :  { %1865 = vmatpush3.msra.mxu0 %v2129_v1  ;;  %1872 = vmatprep.mubr.msk.f32.mxu0 %vm2078_vm1, %v2077_v0  ;;  %v1196_v43 = vpop.permute.xlu1 %1195 }
 0xddb   :  { %1866 = vmatprep.subr.mxu0 %v2077_v0 }
 0xddc   :  { %1867 = vmatpush3.msra.mxu0 %v2133_v3 }
 0xddd   :  { %1868 = vmatprep.subr.mxu0 %v2077_v0 }
 0xdde   :  { %1869 = vmatpush3.msra.mxu0 %v2141_v5 }
 0xddf   :  { %1870 = vmatprep.subr.mxu0 %v2077_v0 }
 0xde0   :  { %1871 = vmatpush3.msra.mxu0 %v2149_v7 }
 0xde1   :  { %1886 = vmatprep.subr.mxu0 %v2077_v0 }
 0xe99   :  { %v1108_v32 = vpop.f32.mrf.mxu0 }
 0xe9a   :  { %v1182_v33 = vadd.f32 %v1181_v30, %v1108_v32 }
 0xe9b   :  { %v1852_v34 = vpop.f32.mrf.mxu0 }
 0xe9c   :  { %v1185_v35 = vadd.f32 %v2186_v12, %v1182_v33 }
 0xe9e   :  { %1960 = vtanh.f32 %v1185_v35  ;;  %v1645_v37 = vmul.f32 -1.442695, %v1185_v35 }
 0xea0   :  { %1962 = vpow2.f32 %v1645_v37 }
 0xeab   :  { %v1961_v36 = vpop.eup %1960 }
 0xeac   :  { %1200 = vrot.lane.b32.xlu0 %v1961_v36, %s2074_s25 }
 0xead   :  { %v1963_v38 = vpop.eup %1962 }
 0xeae   :  { %v1189_v39 = vadd.f32 1.0, %v1963_v38 }
 0xeb0   :  { %1964 = vrcp.f32 %v1189_v39 }
 0xebd   :  { %v1965_v40 = vpop.eup %1964 }
 0xebe   :  { %v1198_v44 = vmul.f32 %v1965_v40, %v1196_v43 }
 0xf1e   :  { %v1201_v41 = vpop.permute.xlu0 %1200 }
 0xf1f   :  { %v1203_v42 = vmul.f32 %v1965_v40, %v1201_v41 }
 0xf21   :  { %1205 = vrot.lane.b32.xlu0 %v1203_v42, %s2074_s25 }
 0xf93   :  { %v1206_v45 = vpop.permute.xlu0 %1205 }
 0xf94   :  { %v1208_v46 = vadd.f32 %v1206_v45, %v1198_v44 }
 0xf96   :  { %1966 = vtanh.f32 %v1208_v46 }
 0xfa3   :  { %v1967_v47 = vpop.eup %1966 }
 0xfa4   :  { %1211 = vrot.lane.b32.xlu1 %v1967_v47, %s2074_s25 }
 0xfa8   :  { %1216 = vrot.lane.b32.xlu1 %v1208_v46, %s2079_s3 }
0x1016   :  { %v1212_v49 = vpop.permute.xlu1 %1211 }
0x1017   :  { %v1214_v50 = vmul.f32 %v1965_v40, %v1212_v49 }
0x1019   :  { %1221 = vrot.lane.b32.xlu0 %v1214_v50, %s2080_s7 }
0x101a   :  { %v1217_v2 = vpop.permute.xlu1 %1216 }
0x101b   :  { %1219 = vst.msk [vmem:[#allocation3] sm:$0x3] %vm63_vm0, %v1217_v2 }
0x1022   :  { %v1384_v51 = vld [vmem:[#allocation3] sm:$0x3] }
0x1023   :  { %1386 = vrot.lane.b32.xlu1 %v1384_v51, %s2074_s25 }
0x108b   :  { %v1222_v52 = vpop.permute.xlu0 %1221 }
0x108c   :  { %1224 = vst.msk [vmem:[#allocation2] sm:$0x3] %vm63_vm0, %v1222_v52  ;;  %1226 = vst.msk [vmem:[#allocation10 + $0xa] sm:$0x3] %vm63_vm0, %v1222_v52 }
0x1093   :  { %v1229_v4 = vld [vmem:[#allocation2] sm:$0x3] }
0x1094   :  { %1873 = vmatmul.mubr.msk.f32.vlgmr.msra.gmra.mxu0 %vm77_vm2, %v1229_v4 }
0x1095   :  { %1887 = vmatpush3.msra.mxu0 %v2129_v1  ;;  %1894 = vmatprep.mubr.msk.f32.mxu0 %vm2078_vm1, %v2077_v0 }
0x1096   :  { %1888 = vmatprep.subr.mxu0 %v2077_v0 }
0x1097   :  { %1889 = vmatpush3.msra.mxu0 %v2133_v3 }
0x1098   :  { %1890 = vmatprep.subr.mxu0 %v2077_v0 }
0x1099   :  { %1891 = vmatpush3.msra.mxu0 %v2141_v5 }
0x109a   :  { %1892 = vmatprep.subr.mxu0 %v2077_v0 }
0x109b   :  { %1893 = vmatpush3.msra.mxu0 %v2149_v7  ;;  %v1387_v7 = vpop.permute.xlu1 %1386 }
0x1154   :  { %v1299_v53 = vpop.f32.mrf.mxu0 }
0x1155   :  { %v1373_v54 = vadd.f32 %v1372_v6, %v1299_v53 }
0x1156   :  { %v1874_v1 = vpop.f32.mrf.mxu0 }
0x1157   :  { %v1376_v55 = vadd.f32 %v2186_v12, %v1373_v54 }
0x1159   :  { %1968 = vtanh.f32 %v1376_v55  ;;  %v1648_v3 = vmul.f32 -1.442695, %v1376_v55 }
0x115b   :  { %1970 = vpow2.f32 %v1648_v3 }
0x1166   :  { %v1969_v56 = vpop.eup %1968 }
0x1167   :  { %1391 = vrot.lane.b32.xlu0 %v1969_v56, %s2074_s25 }
0x1168   :  { %v1971_v57 = vpop.eup %1970 }
0x1169   :  { %v1380_v58 = vadd.f32 1.0, %v1971_v57 }
0x116b   :  { %1972 = vrcp.f32 %v1380_v58 }
0x1178   :  { %v1973_v5 = vpop.eup %1972 }
0x1179   :  { %v1389_v60 = vmul.f32 %v1973_v5, %v1387_v7 }
0x11d9   :  { %v1392_v0 = vpop.permute.xlu0 %1391 }
0x11da   :  { %v1394_v59 = vmul.f32 %v1973_v5, %v1392_v0 }
0x11dc   :  { %1396 = vrot.lane.b32.xlu0 %v1394_v59, %s2074_s25 }
0x124e   :  { %v1397_v61 = vpop.permute.xlu0 %1396 }
0x124f   :  { %v1399_v62 = vadd.f32 %v1397_v61, %v1389_v60 }
0x1251   :  { %1974 = vtanh.f32 %v1399_v62 }
0x125e   :  { %v1975_v63 = vpop.eup %1974 }
0x125f   :  { %1402 = vrot.lane.b32.xlu1 %v1975_v63, %s2074_s25 }
0x1263   :  { %1407 = vrot.lane.b32.xlu1 %v1399_v62, %s2079_s3 }
0x12d1   :  { %v1403_v10 = vpop.permute.xlu1 %1402 }
0x12d2   :  { %v1405_v11 = vmul.f32 %v1973_v5, %v1403_v10 }
0x12d4   :  { %1412 = vrot.lane.b32.xlu0 %v1405_v11, %s2080_s7 }
0x12d5   :  { %v1408_v13 = vpop.permute.xlu1 %1407 }
0x12d6   :  { %1410 = vst.msk [vmem:[#allocation3] sm:$0x3] %vm63_vm0, %v1408_v13 }
0x12dd   :  { %v1575_v14 = vld [vmem:[#allocation3] sm:$0x3] }
0x12de   :  { %1577 = vrot.lane.b32.xlu1 %v1575_v14, %s2074_s25 }
0x1346   :  { %v1413_v15 = vpop.permute.xlu0 %1412 }
0x1347   :  { %1415 = vst.msk [vmem:[#allocation2] sm:$0x3] %vm63_vm0, %v1413_v15  ;;  %1417 = vst.msk [vmem:[#allocation10 + $0xc] sm:$0x3] %vm63_vm0, %v1413_v15 }
0x134e   :  { %v1420_v16 = vld [vmem:[#allocation2] sm:$0x3] }
0x134f   :  { %1895 = vmatmul.mubr.msk.f32.vlgmr.msra.gmra.mxu0 %vm77_vm2, %v1420_v16 }
0x1350   :  { %v1578_v30 = vpop.permute.xlu1 %1577 }
0x140f   :  { %v1490_v19 = vpop.f32.mrf.mxu0 }
0x1410   :  { %v1564_v20 = vadd.f32 %v1563_v17, %v1490_v19 }
0x1411   :  { %v1896_v21 = vpop.f32.mrf.mxu0 }
0x1412   :  { %v1567_v22 = vadd.f32 %v2186_v12, %v1564_v20 }
0x1414   :  { %1976 = vtanh.f32 %v1567_v22  ;;  %v1651_v24 = vmul.f32 -1.442695, %v1567_v22 }
0x1416   :  { %1978 = vpow2.f32 %v1651_v24 }
0x1421   :  { %v1977_v23 = vpop.eup %1976 }
0x1422   :  { %1582 = vrot.lane.b32.xlu0 %v1977_v23, %s2074_s25 }
0x1423   :  { %v1979_v25 = vpop.eup %1978 }
0x1424   :  { %v1571_v26 = vadd.f32 1.0, %v1979_v25 }
0x1426   :  { %1980 = vrcp.f32 %v1571_v26 }
0x1433   :  { %v1981_v27 = vpop.eup %1980 }
0x1434   :  { %v1580_v31 = vmul.f32 %v1981_v27, %v1578_v30 }
0x1494   :  { %v1583_v28 = vpop.permute.xlu0 %1582 }
0x1495   :  { %v1585_v29 = vmul.f32 %v1981_v27, %v1583_v28 }
0x1497   :  { %1587 = vrot.lane.b32.xlu0 %v1585_v29, %s2074_s25 }
0x1509   :  { %v1588_v32 = vpop.permute.xlu0 %1587 }
0x150a   :  { %v1590_v33 = vadd.f32 %v1588_v32, %v1580_v31 }
0x150c   :  { %1982 = vtanh.f32 %v1590_v33 }
0x1519   :  { %v1983_v12 = vpop.eup %1982 }
0x151a   :  { %1593 = vrot.lane.b32.xlu1 %v1983_v12, %s2074_s25 }
0x151e   :  { %1598 = vrot.lane.b32.xlu1 %v1590_v33, %s2079_s3 }
0x158c   :  { %v1594_v34 = vpop.permute.xlu1 %1593 }
0x158d   :  { %v1596_v35 = vmul.f32 %v1981_v27, %v1594_v34 }
0x158f   :  { %1603 = vrot.lane.b32.xlu0 %v1596_v35, %s2080_s7 }
0x1590   :  { %v1599_v36 = vpop.permute.xlu1 %1598 }
0x1591   :  { %1601 = vst.msk [vmem:[#allocation3] sm:$0x3] %vm63_vm0, %v1599_v36 }
0x1601   :  { %v1604_v37 = vpop.permute.xlu0 %1603 }
0x1602   :  { %1606 = vst.msk [vmem:[#allocation2] sm:$0x3] %vm63_vm0, %v1604_v37  ;;  %1608 = vst.msk [vmem:[#allocation10 + $0xe] sm:$0x3] %vm63_vm0, %v1604_v37 }
0x1603   :  { %2055 = shalt.err (!%p2052_p5)
}
0x1604   :  { %1620 = dma.vmem_to_hbm [thread:$0]  %s1615_s9, 256, %s2410_s4, [#allocation6], %s2074_s25, %s2074_s25, %s2075_s26  }
0x1605   :  { %2068 = dma.done.wait [#allocation6], 256  }
0x1606   :  { %2069 = vsyncadd [#allocation6], 4294967040 }
0x1607   :  { %1624 = vsyncpa [#allocation5], 1 }
0x1608   :  { %1625 = vsyncpa [#allocation8], 1 }
0x1609   :  { %1626 = vsyncpa [#allocation6], 1 }

</bundles_post_ra>
